<compile_context>
chip_gen: v7x
topology: tpu7x:2x2x1
jax: 0.10.0
libtpu: 0.0.40
codegen_flags: <defaults>
</compile_context>

<pallas_src>
import functools

import jax
import jax.numpy as jnp
from jax.experimental import pallas as pl
from jax.experimental.pallas import tpu as pltpu

NUM_CLASSES = 4
NPAD = 128  # lane-dense padded head width (store a full 128-lane slab)


# ----------------------------------------------------------------------------
# Fused kernel: embedding gather (one-hot MXU) + LSTM recurrence (PyTorch gate
# order i,f,g,o; h0=c0=0) + batch-first flatten folded into an in-loop head
# accumulation + Linear(T*H -> 4, padded to 128) + masked log_softmax.
# ----------------------------------------------------------------------------
def fused_lstm_head_kernel(ids_ref, emb_ref, w_ih_ref, w_hh_ref, b_ref,
                           w_lin_ref, b_lin_ref, out_ref):
    TB = ids_ref.shape[0]              # T*B, time-major rows (row = t*B + b)
    vocab = emb_ref.shape[0]
    B = out_ref.shape[0]
    T = TB // B
    H = w_hh_ref.shape[-1]

    # ---- embedding gather as a one-hot MXU matmul (off the critical path) --
    ids = ids_ref[...]                                          # (T*B, 1) i32
    tok_iota = jax.lax.broadcasted_iota(jnp.int32, (TB, vocab), 1)
    onehot = jnp.where(ids == tok_iota, 1.0, 0.0).astype(jnp.bfloat16)
    emb = jnp.dot(onehot, emb_ref[...],
                  preferred_element_type=jnp.float32)           # (T*B, E) f32
    emb_b = emb.astype(jnp.bfloat16)   # exact: one-hot selected bf16 rows

    # ---- input projection for ALL timesteps: one MXU pass ------------------
    gates_x = (jnp.dot(emb_b, w_ih_ref[...],
                       preferred_element_type=jnp.float32)
               + b_ref[...])                                    # (T*B, 4H) f32

    # ---- hoist the tiny per-gate recurrent weights (4 * H*H bf16 ~ 8 KiB) --
    w_hh = [w_hh_ref[k] for k in range(4)]                      # each (H, H)

    # ---- serial recurrence; head accumulated in-loop (off the h->h chain) --
    h_b = jnp.zeros((B, H), jnp.bfloat16)
    c = jnp.zeros((B, H), jnp.float32)
    logits = jnp.zeros((B, NPAD), jnp.float32)
    for t in range(T):                     # static trip count, fully unrolled
        row = t * B
        gx_i = gates_x[row:row + B, 0 * H:1 * H]
        gx_f = gates_x[row:row + B, 1 * H:2 * H]
        gx_g = gates_x[row:row + B, 2 * H:3 * H]
        gx_o = gates_x[row:row + B, 3 * H:4 * H]
        if t == 0:                         # h0 == 0: skip the recurrent dots
            pre_i, pre_f, pre_g, pre_o = gx_i, gx_f, gx_g, gx_o
        else:
            pre_i = gx_i + jnp.dot(h_b, w_hh[0],
                                   preferred_element_type=jnp.float32)
            pre_f = gx_f + jnp.dot(h_b, w_hh[1],
                                   preferred_element_type=jnp.float32)
            pre_g = gx_g + jnp.dot(h_b, w_hh[2],
                                   preferred_element_type=jnp.float32)
            pre_o = gx_o + jnp.dot(h_b, w_hh[3],
                                   preferred_element_type=jnp.float32)
        i_g = jax.nn.sigmoid(pre_i)
        f_g = jax.nn.sigmoid(pre_f)
        g_g = jnp.tanh(pre_g)
        o_g = jax.nn.sigmoid(pre_o)
        c = f_g * c + i_g * g_g
        h = o_g * jnp.tanh(c)                                   # (B, H) f32
        h_b = h.astype(jnp.bfloat16)
        # head contribution of h_t; weight slice read at point of use
        logits = logits + jnp.dot(h_b, w_lin_ref[pl.ds(t * H, H), :],
                                  preferred_element_type=jnp.float32)

    logits = logits + b_lin_ref[...]                            # (B, NPAD)

    # ---- masked log_softmax over the 4 valid classes ------------------------
    lane = jax.lax.broadcasted_iota(jnp.int32, logits.shape, 1)
    valid = lane < NUM_CLASSES
    masked = jnp.where(valid, logits, jnp.float32(-1e30))
    m = jnp.max(masked, axis=1, keepdims=True)
    lse = m + jnp.log(jnp.sum(jnp.where(valid, jnp.exp(masked - m), 0.0),
                              axis=1, keepdims=True))
    out_ref[...] = logits - lse            # single lane-dense (B,128) store


# ----------------------------------------------------------------------------
# Wrapper (jitted: the only non-kernel ops are trivial int reshapes / slices)
# ----------------------------------------------------------------------------
def single_lstm_forward(inp, params, *, seq_length, hidden_size):
    B, T = inp.shape
    assert T == seq_length
    H = hidden_size
    TB = T * B
    vocab, E = params["emb_table"].shape

    # time-major flat token ids: row r = t*B + b
    ids_col = inp.T.reshape(TB, 1).astype(jnp.int32)

    padded = pl.pallas_call(
        fused_lstm_head_kernel,
        out_shape=jax.ShapeDtypeStruct((B, NPAD), jnp.float32),
        grid=(1,),
        in_specs=[
            pl.BlockSpec((TB, 1), lambda i: (0, 0)),            # token ids
            pl.BlockSpec((vocab, E), lambda i: (0, 0)),         # emb table bf16
            pl.BlockSpec((E, 4 * H), lambda i: (0, 0)),         # w_ih bf16
            pl.BlockSpec((4, H, H), lambda i: (0, 0, 0)),       # w_hh split bf16
            pl.BlockSpec((1, 4 * H), lambda i: (0, 0)),         # lstm bias f32
            pl.BlockSpec((T * H, NPAD), lambda i: (0, 0)),      # head W bf16
            pl.BlockSpec((1, NPAD), lambda i: (0, 0)),          # head b f32
        ],
        out_specs=pl.BlockSpec((B, NPAD), lambda i: (0, 0)),
        compiler_params=pltpu.CompilerParams(
            dimension_semantics=("arbitrary",)),
    )(ids_col, params["emb_table"], params["w_ih_t"], params["w_hh_stack"],
      params["b_lstm"], params["w_lin_pad"], params["b_lin_pad"])

    return padded[:, :NUM_CLASSES]


# ----------------------------------------------------------------------------
# Parameter init (PyTorch layouts, then transposed / split / padded / bf16)
# ----------------------------------------------------------------------------
def init_params(key, vocab_size, seq_length, emb_size, hidden_size):
    ks = jax.random.split(key, 7)
    u = lambda k, shape: jax.random.uniform(
        k, shape, jnp.float32, minval=-0.1, maxval=0.1)
    H, E, T = hidden_size, emb_size, seq_length
    w_ih = u(ks[0], (4 * H, E))        # PyTorch weight_ih_l0  [i|f|g|o]
    w_hh = u(ks[1], (4 * H, H))        # PyTorch weight_hh_l0
    b_ih = u(ks[2], (4 * H,))
    b_hh = u(ks[3], (4 * H,))
    w_lin = u(ks[4], (NUM_CLASSES, T * H))   # PyTorch nn.Linear weight
    b_lin = u(ks[5], (NUM_CLASSES,))
    emb_table = u(ks[6], (vocab_size, E))

    w_hh_t = w_hh.T                                            # (H, 4H)
    w_hh_stack = jnp.stack(
        [w_hh_t[:, k * H:(k + 1) * H] for k in range(4)], axis=0)  # (4,H,H)

    w_lin_pad = jnp.zeros((T * H, NPAD), jnp.float32)
    w_lin_pad = w_lin_pad.at[:, :NUM_CLASSES].set(w_lin.T)
    b_lin_pad = jnp.zeros((1, NPAD), jnp.float32)
    b_lin_pad = b_lin_pad.at[0, :NUM_CLASSES].set(b_lin)

    return {
        # bf16 MXU operands
        "emb_table": emb_table.astype(jnp.bfloat16),           # (vocab, E)
        "w_ih_t": w_ih.T.astype(jnp.bfloat16),                 # (E, 4H)
        "w_hh_stack": w_hh_stack.astype(jnp.bfloat16),         # (4, H, H)
        "w_lin_pad": w_lin_pad.astype(jnp.bfloat16),           # (T*H, NPAD)
        # f32 biases (elementwise path stays f32)
        "b_lstm": (b_ih + b_hh).reshape(1, 4 * H),             # (1, 4H)
        "b_lin_pad": b_lin_pad,                                # (1, NPAD)
    }


# ----------------------------------------------------------------------------
# Pure-JAX reference (f32 math on the same bf16-rounded weights)
# ----------------------------------------------------------------------------
def reference_forward(inp, params, *, hidden_size):
    H = hidden_size
    emb_tab = params["emb_table"].astype(jnp.float32)
    w_ih = params["w_ih_t"].astype(jnp.float32)                # (E, 4H)
    w_hh_stack = params["w_hh_stack"].astype(jnp.float32)      # (4, H, H)
    w_hh = jnp.concatenate([w_hh_stack[k] for k in range(4)], axis=1)  # (H,4H)
    b = params["b_lstm"]
    emb = emb_tab[inp]                                         # (B, T, E)
    B, T, _ = emb.shape
    h = jnp.zeros((B, H), jnp.float32)
    c = jnp.zeros((B, H), jnp.float32)
    outs = []
    for t in range(T):
        g = emb[:, t, :] @ w_ih + h @ w_hh + b
        i = jax.nn.sigmoid(g[:, :H])
        f = jax.nn.sigmoid(g[:, H:2 * H])
        gg = jnp.tanh(g[:, 2 * H:3 * H])
        o = jax.nn.sigmoid(g[:, 3 * H:])
        c = f * c + i * gg
        h = o * jnp.tanh(c)
        outs.append(h)
    flat = jnp.concatenate(outs, axis=1)                       # (B, T*H)
    w_lin = params["w_lin_pad"].astype(jnp.float32)[:, :NUM_CLASSES]
    b_l = params["b_lin_pad"][0, :NUM_CLASSES]
    logits = flat @ w_lin + b_l
    return jax.nn.log_softmax(logits, axis=1)


if __name__ == "__main__":
    vocab_size, seq_length, emb_size, hidden_size = 50, 8, 16, 32
    batch = 2

    key = jax.random.PRNGKey(0)
    k_tok, k_par = jax.random.split(key)
    inp = jax.random.randint(k_tok, (batch, seq_length), 0, vocab_size,
                             dtype=jnp.int32)
    params = init_params(k_par, vocab_size, seq_length, emb_size, hidden_size)

    fwd = jax.jit(functools.partial(single_lstm_forward,
                                    seq_length=seq_length,
                                    hidden_size=hidden_size))
    logits = fwd(inp, params)
    jax.block_until_ready(logits)
    assert logits.shape == (batch, NUM_CLASSES)
    assert logits.dtype == jnp.float32

    ref = reference_forward(inp, params, hidden_size=hidden_size)
    # bf16 MXU operands (h cast per step) introduce ~1e-3-level drift vs the
    # f32 reference on the same bf16-rounded weights.
    assert jnp.allclose(logits, ref, atol=1e-2, rtol=1e-2), (
        "mismatch vs pure-JAX reference")

    print("KERNEL_OK")
</pallas_src>

<mosaic_0001>
module attributes {stable_mosaic.version = 11 : i64} {
  func.func @fused_lstm_head_kernel(%arg0: i32, %arg1: memref<16x1xi32, #tpu.memory_space<vmem>>, %arg2: memref<50x16xbf16, #tpu.memory_space<vmem>>, %arg3: memref<16x128xbf16, #tpu.memory_space<vmem>>, %arg4: memref<4x32x32xbf16, #tpu.memory_space<vmem>>, %arg5: memref<1x128xf32, #tpu.memory_space<vmem>>, %arg6: memref<256x128xbf16, #tpu.memory_space<vmem>>, %arg7: memref<1x128xf32, #tpu.memory_space<vmem>>, %arg8: memref<2x128xf32, #tpu.memory_space<vmem>>) attributes {dimension_semantics = [#tpu.dimension_semantics<arbitrary>], iteration_bounds = array<i64: 1>, scalar_prefetch = 0 : i64, scratch_operands = 0 : i64, tpu.core_type = #tpu.core_type<tc>, window_params = [{pipeline_mode = #tpu.pipeline_mode<synchronous>, transform_indices = @transform_0, window_bounds = array<i64: 16, 1>}, {pipeline_mode = #tpu.pipeline_mode<synchronous>, transform_indices = @transform_1, window_bounds = array<i64: 50, 16>}, {pipeline_mode = #tpu.pipeline_mode<synchronous>, transform_indices = @transform_2, window_bounds = array<i64: 16, 128>}, {pipeline_mode = #tpu.pipeline_mode<synchronous>, transform_indices = @transform_3, window_bounds = array<i64: 4, 32, 32>}, {pipeline_mode = #tpu.pipeline_mode<synchronous>, transform_indices = @transform_4, window_bounds = array<i64: 1, 128>}, {pipeline_mode = #tpu.pipeline_mode<synchronous>, transform_indices = @transform_5, window_bounds = array<i64: 256, 128>}, {pipeline_mode = #tpu.pipeline_mode<synchronous>, transform_indices = @transform_6, window_bounds = array<i64: 1, 128>}, {pipeline_mode = #tpu.pipeline_mode<synchronous>, transform_indices = @transform_7, window_bounds = array<i64: 2, 128>}]} {
    %c0 = arith.constant 0 : index
    %c0_0 = arith.constant 0 : index
    %0 = vector.load %arg1[%c0, %c0_0] : memref<16x1xi32, #tpu.memory_space<vmem>>, vector<16x1xi32>
    %1 = tpu.iota {dimensions = array<i32: 1>} : vector<16x50xi32>
    %2 = vector.broadcast %0 : vector<16x1xi32> to vector<16x50xi32>
    %3 = arith.cmpi eq, %2, %1 : vector<16x50xi32>
    %cst = arith.constant 1.000000e+00 : f32
    %cst_1 = arith.constant 0.000000e+00 : f32
    %4 = vector.broadcast %cst : f32 to vector<16x50xf32>
    %5 = vector.broadcast %cst_1 : f32 to vector<16x50xf32>
    %6 = arith.select %3, %4, %5 : vector<16x50xi1>, vector<16x50xf32>
    %7 = arith.truncf %6 : vector<16x50xf32> to vector<16x50xbf16>
    %c0_2 = arith.constant 0 : index
    %c0_3 = arith.constant 0 : index
    %8 = vector.load %arg2[%c0_2, %c0_3] : memref<50x16xbf16, #tpu.memory_space<vmem>>, vector<50x16xbf16>
    %cst_4 = arith.constant dense<0.000000e+00> : vector<16x16xf32>
    %9 = tpu.matmul %7, %8, %cst_4 {dimension_numbers = #tpu.dot_dimension_numbers<[1], [0], [0], [1], [0, 0, 1, 1], [], []>} : vector<16x50xbf16>, vector<50x16xbf16>, vector<16x16xf32> -> vector<16x16xf32>
    %10 = arith.truncf %9 : vector<16x16xf32> to vector<16x16xbf16>
    %c0_5 = arith.constant 0 : index
    %c0_6 = arith.constant 0 : index
    %11 = vector.load %arg3[%c0_5, %c0_6] : memref<16x128xbf16, #tpu.memory_space<vmem>>, vector<16x128xbf16>
    %cst_7 = arith.constant dense<0.000000e+00> : vector<16x128xf32>
    %12 = tpu.matmul %10, %11, %cst_7 {dimension_numbers = #tpu.dot_dimension_numbers<[1], [0], [0], [1], [0, 0, 1, 1], [], []>} : vector<16x16xbf16>, vector<16x128xbf16>, vector<16x128xf32> -> vector<16x128xf32>
    %c0_8 = arith.constant 0 : index
    %c0_9 = arith.constant 0 : index
    %13 = vector.load %arg5[%c0_8, %c0_9] : memref<1x128xf32, #tpu.memory_space<vmem>>, vector<1x128xf32>
    %14 = vector.broadcast %13 : vector<1x128xf32> to vector<16x128xf32>
    %15 = arith.addf %12, %14 : vector<16x128xf32>
    %c0_10 = arith.constant 0 : index
    %c0_11 = arith.constant 0 : index
    %c0_12 = arith.constant 0 : index
    %16 = vector.load %arg4[%c0_10, %c0_11, %c0_12] : memref<4x32x32xbf16, #tpu.memory_space<vmem>>, vector<1x32x32xbf16>
    %17 = vector.shape_cast %16 : vector<1x32x32xbf16> to vector<32x32xbf16>
    %c1 = arith.constant 1 : index
    %c0_13 = arith.constant 0 : index
    %c0_14 = arith.constant 0 : index
    %18 = vector.load %arg4[%c1, %c0_13, %c0_14] : memref<4x32x32xbf16, #tpu.memory_space<vmem>>, vector<1x32x32xbf16>
    %19 = vector.shape_cast %18 : vector<1x32x32xbf16> to vector<32x32xbf16>
    %c2 = arith.constant 2 : index
    %c0_15 = arith.constant 0 : index
    %c0_16 = arith.constant 0 : index
    %20 = vector.load %arg4[%c2, %c0_15, %c0_16] : memref<4x32x32xbf16, #tpu.memory_space<vmem>>, vector<1x32x32xbf16>
    %21 = vector.shape_cast %20 : vector<1x32x32xbf16> to vector<32x32xbf16>
    %c3 = arith.constant 3 : index
    %c0_17 = arith.constant 0 : index
    %c0_18 = arith.constant 0 : index
    %22 = vector.load %arg4[%c3, %c0_17, %c0_18] : memref<4x32x32xbf16, #tpu.memory_space<vmem>>, vector<1x32x32xbf16>
    %23 = vector.shape_cast %22 : vector<1x32x32xbf16> to vector<32x32xbf16>
    %cst_19 = arith.constant 0.000000e+00 : f32
    %24 = vector.broadcast %cst_19 : f32 to vector<2x32xf32>
    %cst_20 = arith.constant 0.000000e+00 : f32
    %25 = vector.broadcast %cst_20 : f32 to vector<2x128xf32>
    %26 = vector.extract_strided_slice %15 {offsets = [0, 0], sizes = [2, 32], strides = [1, 1]} : vector<16x128xf32> to vector<2x32xf32>
    %27 = vector.extract_strided_slice %15 {offsets = [0, 32], sizes = [2, 32], strides = [1, 1]} : vector<16x128xf32> to vector<2x32xf32>
    %28 = vector.extract_strided_slice %15 {offsets = [0, 64], sizes = [2, 32], strides = [1, 1]} : vector<16x128xf32> to vector<2x32xf32>
    %29 = vector.extract_strided_slice %15 {offsets = [0, 96], sizes = [2, 32], strides = [1, 1]} : vector<16x128xf32> to vector<2x32xf32>
    %30 = arith.negf %26 : vector<2x32xf32>
    %31 = math.exp %30 : vector<2x32xf32>
    %cst_21 = arith.constant 1.000000e+00 : f32
    %32 = vector.broadcast %cst_21 : f32 to vector<2x32xf32>
    %33 = arith.addf %32, %31 : vector<2x32xf32>
    %34 = arith.divf %32, %33 : vector<2x32xf32>
    %35 = arith.negf %27 : vector<2x32xf32>
    %36 = math.exp %35 : vector<2x32xf32>
    %cst_22 = arith.constant 1.000000e+00 : f32
    %37 = vector.broadcast %cst_22 : f32 to vector<2x32xf32>
    %38 = arith.addf %37, %36 : vector<2x32xf32>
    %39 = arith.divf %37, %38 : vector<2x32xf32>
    %40 = math.tanh %28 : vector<2x32xf32>
    %41 = arith.negf %29 : vector<2x32xf32>
    %42 = math.exp %41 : vector<2x32xf32>
    %cst_23 = arith.constant 1.000000e+00 : f32
    %43 = vector.broadcast %cst_23 : f32 to vector<2x32xf32>
    %44 = arith.addf %43, %42 : vector<2x32xf32>
    %45 = arith.divf %43, %44 : vector<2x32xf32>
    %46 = arith.mulf %39, %24 : vector<2x32xf32>
    %47 = arith.mulf %34, %40 : vector<2x32xf32>
    %48 = arith.addf %46, %47 : vector<2x32xf32>
    %49 = math.tanh %48 : vector<2x32xf32>
    %50 = arith.mulf %45, %49 : vector<2x32xf32>
    %51 = arith.truncf %50 : vector<2x32xf32> to vector<2x32xbf16>
    %c0_24 = arith.constant 0 : index
    %c0_25 = arith.constant 0 : index
    %52 = vector.load %arg6[%c0_24, %c0_25] : memref<256x128xbf16, #tpu.memory_space<vmem>>, vector<32x128xbf16>
    %cst_26 = arith.constant dense<0.000000e+00> : vector<2x128xf32>
    %53 = tpu.matmul %51, %52, %cst_26 {dimension_numbers = #tpu.dot_dimension_numbers<[1], [0], [0], [1], [0, 0, 1, 1], [], []>} : vector<2x32xbf16>, vector<32x128xbf16>, vector<2x128xf32> -> vector<2x128xf32>
    %54 = arith.addf %25, %53 : vector<2x128xf32>
    %55 = vector.extract_strided_slice %15 {offsets = [2, 0], sizes = [2, 32], strides = [1, 1]} : vector<16x128xf32> to vector<2x32xf32>
    %56 = vector.extract_strided_slice %15 {offsets = [2, 32], sizes = [2, 32], strides = [1, 1]} : vector<16x128xf32> to vector<2x32xf32>
    %57 = vector.extract_strided_slice %15 {offsets = [2, 64], sizes = [2, 32], strides = [1, 1]} : vector<16x128xf32> to vector<2x32xf32>
    %58 = vector.extract_strided_slice %15 {offsets = [2, 96], sizes = [2, 32], strides = [1, 1]} : vector<16x128xf32> to vector<2x32xf32>
    %cst_27 = arith.constant dense<0.000000e+00> : vector<2x32xf32>
    %59 = tpu.matmul %51, %17, %cst_27 {dimension_numbers = #tpu.dot_dimension_numbers<[1], [0], [0], [1], [0, 0, 1, 1], [], []>} : vector<2x32xbf16>, vector<32x32xbf16>, vector<2x32xf32> -> vector<2x32xf32>
    %60 = arith.addf %55, %59 : vector<2x32xf32>
    %cst_28 = arith.constant dense<0.000000e+00> : vector<2x32xf32>
    %61 = tpu.matmul %51, %19, %cst_28 {dimension_numbers = #tpu.dot_dimension_numbers<[1], [0], [0], [1], [0, 0, 1, 1], [], []>} : vector<2x32xbf16>, vector<32x32xbf16>, vector<2x32xf32> -> vector<2x32xf32>
    %62 = arith.addf %56, %61 : vector<2x32xf32>
    %cst_29 = arith.constant dense<0.000000e+00> : vector<2x32xf32>
    %63 = tpu.matmul %51, %21, %cst_29 {dimension_numbers = #tpu.dot_dimension_numbers<[1], [0], [0], [1], [0, 0, 1, 1], [], []>} : vector<2x32xbf16>, vector<32x32xbf16>, vector<2x32xf32> -> vector<2x32xf32>
    %64 = arith.addf %57, %63 : vector<2x32xf32>
    %cst_30 = arith.constant dense<0.000000e+00> : vector<2x32xf32>
    %65 = tpu.matmul %51, %23, %cst_30 {dimension_numbers = #tpu.dot_dimension_numbers<[1], [0], [0], [1], [0, 0, 1, 1], [], []>} : vector<2x32xbf16>, vector<32x32xbf16>, vector<2x32xf32> -> vector<2x32xf32>
    %66 = arith.addf %58, %65 : vector<2x32xf32>
    %67 = arith.negf %60 : vector<2x32xf32>
    %68 = math.exp %67 : vector<2x32xf32>
    %cst_31 = arith.constant 1.000000e+00 : f32
    %69 = vector.broadcast %cst_31 : f32 to vector<2x32xf32>
    %70 = arith.addf %69, %68 : vector<2x32xf32>
    %71 = arith.divf %69, %70 : vector<2x32xf32>
    %72 = arith.negf %62 : vector<2x32xf32>
    %73 = math.exp %72 : vector<2x32xf32>
    %cst_32 = arith.constant 1.000000e+00 : f32
    %74 = vector.broadcast %cst_32 : f32 to vector<2x32xf32>
    %75 = arith.addf %74, %73 : vector<2x32xf32>
    %76 = arith.divf %74, %75 : vector<2x32xf32>
    %77 = math.tanh %64 : vector<2x32xf32>
    %78 = arith.negf %66 : vector<2x32xf32>
    %79 = math.exp %78 : vector<2x32xf32>
    %cst_33 = arith.constant 1.000000e+00 : f32
    %80 = vector.broadcast %cst_33 : f32 to vector<2x32xf32>
    %81 = arith.addf %80, %79 : vector<2x32xf32>
    %82 = arith.divf %80, %81 : vector<2x32xf32>
    %83 = arith.mulf %76, %48 : vector<2x32xf32>
    %84 = arith.mulf %71, %77 : vector<2x32xf32>
    %85 = arith.addf %83, %84 : vector<2x32xf32>
    %86 = math.tanh %85 : vector<2x32xf32>
    %87 = arith.mulf %82, %86 : vector<2x32xf32>
    %88 = arith.truncf %87 : vector<2x32xf32> to vector<2x32xbf16>
    %c32 = arith.constant 32 : index
    %c0_34 = arith.constant 0 : index
    %89 = vector.load %arg6[%c32, %c0_34] : memref<256x128xbf16, #tpu.memory_space<vmem>>, vector<32x128xbf16>
    %cst_35 = arith.constant dense<0.000000e+00> : vector<2x128xf32>
    %90 = tpu.matmul %88, %89, %cst_35 {dimension_numbers = #tpu.dot_dimension_numbers<[1], [0], [0], [1], [0, 0, 1, 1], [], []>} : vector<2x32xbf16>, vector<32x128xbf16>, vector<2x128xf32> -> vector<2x128xf32>
    %91 = arith.addf %54, %90 : vector<2x128xf32>
    %92 = vector.extract_strided_slice %15 {offsets = [4, 0], sizes = [2, 32], strides = [1, 1]} : vector<16x128xf32> to vector<2x32xf32>
    %93 = vector.extract_strided_slice %15 {offsets = [4, 32], sizes = [2, 32], strides = [1, 1]} : vector<16x128xf32> to vector<2x32xf32>
    %94 = vector.extract_strided_slice %15 {offsets = [4, 64], sizes = [2, 32], strides = [1, 1]} : vector<16x128xf32> to vector<2x32xf32>
    %95 = vector.extract_strided_slice %15 {offsets = [4, 96], sizes = [2, 32], strides = [1, 1]} : vector<16x128xf32> to vector<2x32xf32>
    %cst_36 = arith.constant dense<0.000000e+00> : vector<2x32xf32>
    %96 = tpu.matmul %88, %17, %cst_36 {dimension_numbers = #tpu.dot_dimension_numbers<[1], [0], [0], [1], [0, 0, 1, 1], [], []>} : vector<2x32xbf16>, vector<32x32xbf16>, vector<2x32xf32> -> vector<2x32xf32>
    %97 = arith.addf %92, %96 : vector<2x32xf32>
    %cst_37 = arith.constant dense<0.000000e+00> : vector<2x32xf32>
    %98 = tpu.matmul %88, %19, %cst_37 {dimension_numbers = #tpu.dot_dimension_numbers<[1], [0], [0], [1], [0, 0, 1, 1], [], []>} : vector<2x32xbf16>, vector<32x32xbf16>, vector<2x32xf32> -> vector<2x32xf32>
    %99 = arith.addf %93, %98 : vector<2x32xf32>
    %cst_38 = arith.constant dense<0.000000e+00> : vector<2x32xf32>
    %100 = tpu.matmul %88, %21, %cst_38 {dimension_numbers = #tpu.dot_dimension_numbers<[1], [0], [0], [1], [0, 0, 1, 1], [], []>} : vector<2x32xbf16>, vector<32x32xbf16>, vector<2x32xf32> -> vector<2x32xf32>
    %101 = arith.addf %94, %100 : vector<2x32xf32>
    %cst_39 = arith.constant dense<0.000000e+00> : vector<2x32xf32>
    %102 = tpu.matmul %88, %23, %cst_39 {dimension_numbers = #tpu.dot_dimension_numbers<[1], [0], [0], [1], [0, 0, 1, 1], [], []>} : vector<2x32xbf16>, vector<32x32xbf16>, vector<2x32xf32> -> vector<2x32xf32>
    %103 = arith.addf %95, %102 : vector<2x32xf32>
    %104 = arith.negf %97 : vector<2x32xf32>
    %105 = math.exp %104 : vector<2x32xf32>
    %cst_40 = arith.constant 1.000000e+00 : f32
    %106 = vector.broadcast %cst_40 : f32 to vector<2x32xf32>
    %107 = arith.addf %106, %105 : vector<2x32xf32>
    %108 = arith.divf %106, %107 : vector<2x32xf32>
    %109 = arith.negf %99 : vector<2x32xf32>
    %110 = math.exp %109 : vector<2x32xf32>
    %cst_41 = arith.constant 1.000000e+00 : f32
    %111 = vector.broadcast %cst_41 : f32 to vector<2x32xf32>
    %112 = arith.addf %111, %110 : vector<2x32xf32>
    %113 = arith.divf %111, %112 : vector<2x32xf32>
    %114 = math.tanh %101 : vector<2x32xf32>
    %115 = arith.negf %103 : vector<2x32xf32>
    %116 = math.exp %115 : vector<2x32xf32>
    %cst_42 = arith.constant 1.000000e+00 : f32
    %117 = vector.broadcast %cst_42 : f32 to vector<2x32xf32>
    %118 = arith.addf %117, %116 : vector<2x32xf32>
    %119 = arith.divf %117, %118 : vector<2x32xf32>
    %120 = arith.mulf %113, %85 : vector<2x32xf32>
    %121 = arith.mulf %108, %114 : vector<2x32xf32>
    %122 = arith.addf %120, %121 : vector<2x32xf32>
    %123 = math.tanh %122 : vector<2x32xf32>
    %124 = arith.mulf %119, %123 : vector<2x32xf32>
    %125 = arith.truncf %124 : vector<2x32xf32> to vector<2x32xbf16>
    %c64 = arith.constant 64 : index
    %c0_43 = arith.constant 0 : index
    %126 = vector.load %arg6[%c64, %c0_43] : memref<256x128xbf16, #tpu.memory_space<vmem>>, vector<32x128xbf16>
    %cst_44 = arith.constant dense<0.000000e+00> : vector<2x128xf32>
    %127 = tpu.matmul %125, %126, %cst_44 {dimension_numbers = #tpu.dot_dimension_numbers<[1], [0], [0], [1], [0, 0, 1, 1], [], []>} : vector<2x32xbf16>, vector<32x128xbf16>, vector<2x128xf32> -> vector<2x128xf32>
    %128 = arith.addf %91, %127 : vector<2x128xf32>
    %129 = vector.extract_strided_slice %15 {offsets = [6, 0], sizes = [2, 32], strides = [1, 1]} : vector<16x128xf32> to vector<2x32xf32>
    %130 = vector.extract_strided_slice %15 {offsets = [6, 32], sizes = [2, 32], strides = [1, 1]} : vector<16x128xf32> to vector<2x32xf32>
    %131 = vector.extract_strided_slice %15 {offsets = [6, 64], sizes = [2, 32], strides = [1, 1]} : vector<16x128xf32> to vector<2x32xf32>
    %132 = vector.extract_strided_slice %15 {offsets = [6, 96], sizes = [2, 32], strides = [1, 1]} : vector<16x128xf32> to vector<2x32xf32>
    %cst_45 = arith.constant dense<0.000000e+00> : vector<2x32xf32>
    %133 = tpu.matmul %125, %17, %cst_45 {dimension_numbers = #tpu.dot_dimension_numbers<[1], [0], [0], [1], [0, 0, 1, 1], [], []>} : vector<2x32xbf16>, vector<32x32xbf16>, vector<2x32xf32> -> vector<2x32xf32>
    %134 = arith.addf %129, %133 : vector<2x32xf32>
    %cst_46 = arith.constant dense<0.000000e+00> : vector<2x32xf32>
    %135 = tpu.matmul %125, %19, %cst_46 {dimension_numbers = #tpu.dot_dimension_numbers<[1], [0], [0], [1], [0, 0, 1, 1], [], []>} : vector<2x32xbf16>, vector<32x32xbf16>, vector<2x32xf32> -> vector<2x32xf32>
    %136 = arith.addf %130, %135 : vector<2x32xf32>
    %cst_47 = arith.constant dense<0.000000e+00> : vector<2x32xf32>
    %137 = tpu.matmul %125, %21, %cst_47 {dimension_numbers = #tpu.dot_dimension_numbers<[1], [0], [0], [1], [0, 0, 1, 1], [], []>} : vector<2x32xbf16>, vector<32x32xbf16>, vector<2x32xf32> -> vector<2x32xf32>
    %138 = arith.addf %131, %137 : vector<2x32xf32>
    %cst_48 = arith.constant dense<0.000000e+00> : vector<2x32xf32>
    %139 = tpu.matmul %125, %23, %cst_48 {dimension_numbers = #tpu.dot_dimension_numbers<[1], [0], [0], [1], [0, 0, 1, 1], [], []>} : vector<2x32xbf16>, vector<32x32xbf16>, vector<2x32xf32> -> vector<2x32xf32>
    %140 = arith.addf %132, %139 : vector<2x32xf32>
    %141 = arith.negf %134 : vector<2x32xf32>
    %142 = math.exp %141 : vector<2x32xf32>
    %cst_49 = arith.constant 1.000000e+00 : f32
    %143 = vector.broadcast %cst_49 : f32 to vector<2x32xf32>
    %144 = arith.addf %143, %142 : vector<2x32xf32>
    %145 = arith.divf %143, %144 : vector<2x32xf32>
    %146 = arith.negf %136 : vector<2x32xf32>
    %147 = math.exp %146 : vector<2x32xf32>
    %cst_50 = arith.constant 1.000000e+00 : f32
    %148 = vector.broadcast %cst_50 : f32 to vector<2x32xf32>
    %149 = arith.addf %148, %147 : vector<2x32xf32>
    %150 = arith.divf %148, %149 : vector<2x32xf32>
    %151 = math.tanh %138 : vector<2x32xf32>
    %152 = arith.negf %140 : vector<2x32xf32>
    %153 = math.exp %152 : vector<2x32xf32>
    %cst_51 = arith.constant 1.000000e+00 : f32
    %154 = vector.broadcast %cst_51 : f32 to vector<2x32xf32>
    %155 = arith.addf %154, %153 : vector<2x32xf32>
    %156 = arith.divf %154, %155 : vector<2x32xf32>
    %157 = arith.mulf %150, %122 : vector<2x32xf32>
    %158 = arith.mulf %145, %151 : vector<2x32xf32>
    %159 = arith.addf %157, %158 : vector<2x32xf32>
    %160 = math.tanh %159 : vector<2x32xf32>
    %161 = arith.mulf %156, %160 : vector<2x32xf32>
    %162 = arith.truncf %161 : vector<2x32xf32> to vector<2x32xbf16>
    %c96 = arith.constant 96 : index
    %c0_52 = arith.constant 0 : index
    %163 = vector.load %arg6[%c96, %c0_52] : memref<256x128xbf16, #tpu.memory_space<vmem>>, vector<32x128xbf16>
    %cst_53 = arith.constant dense<0.000000e+00> : vector<2x128xf32>
    %164 = tpu.matmul %162, %163, %cst_53 {dimension_numbers = #tpu.dot_dimension_numbers<[1], [0], [0], [1], [0, 0, 1, 1], [], []>} : vector<2x32xbf16>, vector<32x128xbf16>, vector<2x128xf32> -> vector<2x128xf32>
    %165 = arith.addf %128, %164 : vector<2x128xf32>
    %166 = vector.extract_strided_slice %15 {offsets = [8, 0], sizes = [2, 32], strides = [1, 1]} : vector<16x128xf32> to vector<2x32xf32>
    %167 = vector.extract_strided_slice %15 {offsets = [8, 32], sizes = [2, 32], strides = [1, 1]} : vector<16x128xf32> to vector<2x32xf32>
    %168 = vector.extract_strided_slice %15 {offsets = [8, 64], sizes = [2, 32], strides = [1, 1]} : vector<16x128xf32> to vector<2x32xf32>
    %169 = vector.extract_strided_slice %15 {offsets = [8, 96], sizes = [2, 32], strides = [1, 1]} : vector<16x128xf32> to vector<2x32xf32>
    %cst_54 = arith.constant dense<0.000000e+00> : vector<2x32xf32>
    %170 = tpu.matmul %162, %17, %cst_54 {dimension_numbers = #tpu.dot_dimension_numbers<[1], [0], [0], [1], [0, 0, 1, 1], [], []>} : vector<2x32xbf16>, vector<32x32xbf16>, vector<2x32xf32> -> vector<2x32xf32>
    %171 = arith.addf %166, %170 : vector<2x32xf32>
    %cst_55 = arith.constant dense<0.000000e+00> : vector<2x32xf32>
    %172 = tpu.matmul %162, %19, %cst_55 {dimension_numbers = #tpu.dot_dimension_numbers<[1], [0], [0], [1], [0, 0, 1, 1], [], []>} : vector<2x32xbf16>, vector<32x32xbf16>, vector<2x32xf32> -> vector<2x32xf32>
    %173 = arith.addf %167, %172 : vector<2x32xf32>
    %cst_56 = arith.constant dense<0.000000e+00> : vector<2x32xf32>
    %174 = tpu.matmul %162, %21, %cst_56 {dimension_numbers = #tpu.dot_dimension_numbers<[1], [0], [0], [1], [0, 0, 1, 1], [], []>} : vector<2x32xbf16>, vector<32x32xbf16>, vector<2x32xf32> -> vector<2x32xf32>
    %175 = arith.addf %168, %174 : vector<2x32xf32>
    %cst_57 = arith.constant dense<0.000000e+00> : vector<2x32xf32>
    %176 = tpu.matmul %162, %23, %cst_57 {dimension_numbers = #tpu.dot_dimension_numbers<[1], [0], [0], [1], [0, 0, 1, 1], [], []>} : vector<2x32xbf16>, vector<32x32xbf16>, vector<2x32xf32> -> vector<2x32xf32>
    %177 = arith.addf %169, %176 : vector<2x32xf32>
    %178 = arith.negf %171 : vector<2x32xf32>
    %179 = math.exp %178 : vector<2x32xf32>
    %cst_58 = arith.constant 1.000000e+00 : f32
    %180 = vector.broadcast %cst_58 : f32 to vector<2x32xf32>
    %181 = arith.addf %180, %179 : vector<2x32xf32>
    %182 = arith.divf %180, %181 : vector<2x32xf32>
    %183 = arith.negf %173 : vector<2x32xf32>
    %184 = math.exp %183 : vector<2x32xf32>
    %cst_59 = arith.constant 1.000000e+00 : f32
    %185 = vector.broadcast %cst_59 : f32 to vector<2x32xf32>
    %186 = arith.addf %185, %184 : vector<2x32xf32>
    %187 = arith.divf %185, %186 : vector<2x32xf32>
    %188 = math.tanh %175 : vector<2x32xf32>
    %189 = arith.negf %177 : vector<2x32xf32>
    %190 = math.exp %189 : vector<2x32xf32>
    %cst_60 = arith.constant 1.000000e+00 : f32
    %191 = vector.broadcast %cst_60 : f32 to vector<2x32xf32>
    %192 = arith.addf %191, %190 : vector<2x32xf32>
    %193 = arith.divf %191, %192 : vector<2x32xf32>
    %194 = arith.mulf %187, %159 : vector<2x32xf32>
    %195 = arith.mulf %182, %188 : vector<2x32xf32>
    %196 = arith.addf %194, %195 : vector<2x32xf32>
    %197 = math.tanh %196 : vector<2x32xf32>
    %198 = arith.mulf %193, %197 : vector<2x32xf32>
    %199 = arith.truncf %198 : vector<2x32xf32> to vector<2x32xbf16>
    %c128 = arith.constant 128 : index
    %c0_61 = arith.constant 0 : index
    %200 = vector.load %arg6[%c128, %c0_61] : memref<256x128xbf16, #tpu.memory_space<vmem>>, vector<32x128xbf16>
    %cst_62 = arith.constant dense<0.000000e+00> : vector<2x128xf32>
    %201 = tpu.matmul %199, %200, %cst_62 {dimension_numbers = #tpu.dot_dimension_numbers<[1], [0], [0], [1], [0, 0, 1, 1], [], []>} : vector<2x32xbf16>, vector<32x128xbf16>, vector<2x128xf32> -> vector<2x128xf32>
    %202 = arith.addf %165, %201 : vector<2x128xf32>
    %203 = vector.extract_strided_slice %15 {offsets = [10, 0], sizes = [2, 32], strides = [1, 1]} : vector<16x128xf32> to vector<2x32xf32>
    %204 = vector.extract_strided_slice %15 {offsets = [10, 32], sizes = [2, 32], strides = [1, 1]} : vector<16x128xf32> to vector<2x32xf32>
    %205 = vector.extract_strided_slice %15 {offsets = [10, 64], sizes = [2, 32], strides = [1, 1]} : vector<16x128xf32> to vector<2x32xf32>
    %206 = vector.extract_strided_slice %15 {offsets = [10, 96], sizes = [2, 32], strides = [1, 1]} : vector<16x128xf32> to vector<2x32xf32>
    %cst_63 = arith.constant dense<0.000000e+00> : vector<2x32xf32>
    %207 = tpu.matmul %199, %17, %cst_63 {dimension_numbers = #tpu.dot_dimension_numbers<[1], [0], [0], [1], [0, 0, 1, 1], [], []>} : vector<2x32xbf16>, vector<32x32xbf16>, vector<2x32xf32> -> vector<2x32xf32>
    %208 = arith.addf %203, %207 : vector<2x32xf32>
    %cst_64 = arith.constant dense<0.000000e+00> : vector<2x32xf32>
    %209 = tpu.matmul %199, %19, %cst_64 {dimension_numbers = #tpu.dot_dimension_numbers<[1], [0], [0], [1], [0, 0, 1, 1], [], []>} : vector<2x32xbf16>, vector<32x32xbf16>, vector<2x32xf32> -> vector<2x32xf32>
    %210 = arith.addf %204, %209 : vector<2x32xf32>
    %cst_65 = arith.constant dense<0.000000e+00> : vector<2x32xf32>
    %211 = tpu.matmul %199, %21, %cst_65 {dimension_numbers = #tpu.dot_dimension_numbers<[1], [0], [0], [1], [0, 0, 1, 1], [], []>} : vector<2x32xbf16>, vector<32x32xbf16>, vector<2x32xf32> -> vector<2x32xf32>
    %212 = arith.addf %205, %211 : vector<2x32xf32>
    %cst_66 = arith.constant dense<0.000000e+00> : vector<2x32xf32>
    %213 = tpu.matmul %199, %23, %cst_66 {dimension_numbers = #tpu.dot_dimension_numbers<[1], [0], [0], [1], [0, 0, 1, 1], [], []>} : vector<2x32xbf16>, vector<32x32xbf16>, vector<2x32xf32> -> vector<2x32xf32>
    %214 = arith.addf %206, %213 : vector<2x32xf32>
    %215 = arith.negf %208 : vector<2x32xf32>
    %216 = math.exp %215 : vector<2x32xf32>
    %cst_67 = arith.constant 1.000000e+00 : f32
    %217 = vector.broadcast %cst_67 : f32 to vector<2x32xf32>
    %218 = arith.addf %217, %216 : vector<2x32xf32>
    %219 = arith.divf %217, %218 : vector<2x32xf32>
    %220 = arith.negf %210 : vector<2x32xf32>
    %221 = math.exp %220 : vector<2x32xf32>
    %cst_68 = arith.constant 1.000000e+00 : f32
    %222 = vector.broadcast %cst_68 : f32 to vector<2x32xf32>
    %223 = arith.addf %222, %221 : vector<2x32xf32>
    %224 = arith.divf %222, %223 : vector<2x32xf32>
    %225 = math.tanh %212 : vector<2x32xf32>
    %226 = arith.negf %214 : vector<2x32xf32>
    %227 = math.exp %226 : vector<2x32xf32>
    %cst_69 = arith.constant 1.000000e+00 : f32
    %228 = vector.broadcast %cst_69 : f32 to vector<2x32xf32>
    %229 = arith.addf %228, %227 : vector<2x32xf32>
    %230 = arith.divf %228, %229 : vector<2x32xf32>
    %231 = arith.mulf %224, %196 : vector<2x32xf32>
    %232 = arith.mulf %219, %225 : vector<2x32xf32>
    %233 = arith.addf %231, %232 : vector<2x32xf32>
    %234 = math.tanh %233 : vector<2x32xf32>
    %235 = arith.mulf %230, %234 : vector<2x32xf32>
    %236 = arith.truncf %235 : vector<2x32xf32> to vector<2x32xbf16>
    %c160 = arith.constant 160 : index
    %c0_70 = arith.constant 0 : index
    %237 = vector.load %arg6[%c160, %c0_70] : memref<256x128xbf16, #tpu.memory_space<vmem>>, vector<32x128xbf16>
    %cst_71 = arith.constant dense<0.000000e+00> : vector<2x128xf32>
    %238 = tpu.matmul %236, %237, %cst_71 {dimension_numbers = #tpu.dot_dimension_numbers<[1], [0], [0], [1], [0, 0, 1, 1], [], []>} : vector<2x32xbf16>, vector<32x128xbf16>, vector<2x128xf32> -> vector<2x128xf32>
    %239 = arith.addf %202, %238 : vector<2x128xf32>
    %240 = vector.extract_strided_slice %15 {offsets = [12, 0], sizes = [2, 32], strides = [1, 1]} : vector<16x128xf32> to vector<2x32xf32>
    %241 = vector.extract_strided_slice %15 {offsets = [12, 32], sizes = [2, 32], strides = [1, 1]} : vector<16x128xf32> to vector<2x32xf32>
    %242 = vector.extract_strided_slice %15 {offsets = [12, 64], sizes = [2, 32], strides = [1, 1]} : vector<16x128xf32> to vector<2x32xf32>
    %243 = vector.extract_strided_slice %15 {offsets = [12, 96], sizes = [2, 32], strides = [1, 1]} : vector<16x128xf32> to vector<2x32xf32>
    %cst_72 = arith.constant dense<0.000000e+00> : vector<2x32xf32>
    %244 = tpu.matmul %236, %17, %cst_72 {dimension_numbers = #tpu.dot_dimension_numbers<[1], [0], [0], [1], [0, 0, 1, 1], [], []>} : vector<2x32xbf16>, vector<32x32xbf16>, vector<2x32xf32> -> vector<2x32xf32>
    %245 = arith.addf %240, %244 : vector<2x32xf32>
    %cst_73 = arith.constant dense<0.000000e+00> : vector<2x32xf32>
    %246 = tpu.matmul %236, %19, %cst_73 {dimension_numbers = #tpu.dot_dimension_numbers<[1], [0], [0], [1], [0, 0, 1, 1], [], []>} : vector<2x32xbf16>, vector<32x32xbf16>, vector<2x32xf32> -> vector<2x32xf32>
    %247 = arith.addf %241, %246 : vector<2x32xf32>
    %cst_74 = arith.constant dense<0.000000e+00> : vector<2x32xf32>
    %248 = tpu.matmul %236, %21, %cst_74 {dimension_numbers = #tpu.dot_dimension_numbers<[1], [0], [0], [1], [0, 0, 1, 1], [], []>} : vector<2x32xbf16>, vector<32x32xbf16>, vector<2x32xf32> -> vector<2x32xf32>
    %249 = arith.addf %242, %248 : vector<2x32xf32>
    %cst_75 = arith.constant dense<0.000000e+00> : vector<2x32xf32>
    %250 = tpu.matmul %236, %23, %cst_75 {dimension_numbers = #tpu.dot_dimension_numbers<[1], [0], [0], [1], [0, 0, 1, 1], [], []>} : vector<2x32xbf16>, vector<32x32xbf16>, vector<2x32xf32> -> vector<2x32xf32>
    %251 = arith.addf %243, %250 : vector<2x32xf32>
    %252 = arith.negf %245 : vector<2x32xf32>
    %253 = math.exp %252 : vector<2x32xf32>
    %cst_76 = arith.constant 1.000000e+00 : f32
    %254 = vector.broadcast %cst_76 : f32 to vector<2x32xf32>
    %255 = arith.addf %254, %253 : vector<2x32xf32>
    %256 = arith.divf %254, %255 : vector<2x32xf32>
    %257 = arith.negf %247 : vector<2x32xf32>
    %258 = math.exp %257 : vector<2x32xf32>
    %cst_77 = arith.constant 1.000000e+00 : f32
    %259 = vector.broadcast %cst_77 : f32 to vector<2x32xf32>
    %260 = arith.addf %259, %258 : vector<2x32xf32>
    %261 = arith.divf %259, %260 : vector<2x32xf32>
    %262 = math.tanh %249 : vector<2x32xf32>
    %263 = arith.negf %251 : vector<2x32xf32>
    %264 = math.exp %263 : vector<2x32xf32>
    %cst_78 = arith.constant 1.000000e+00 : f32
    %265 = vector.broadcast %cst_78 : f32 to vector<2x32xf32>
    %266 = arith.addf %265, %264 : vector<2x32xf32>
    %267 = arith.divf %265, %266 : vector<2x32xf32>
    %268 = arith.mulf %261, %233 : vector<2x32xf32>
    %269 = arith.mulf %256, %262 : vector<2x32xf32>
    %270 = arith.addf %268, %269 : vector<2x32xf32>
    %271 = math.tanh %270 : vector<2x32xf32>
    %272 = arith.mulf %267, %271 : vector<2x32xf32>
    %273 = arith.truncf %272 : vector<2x32xf32> to vector<2x32xbf16>
    %c192 = arith.constant 192 : index
    %c0_79 = arith.constant 0 : index
    %274 = vector.load %arg6[%c192, %c0_79] : memref<256x128xbf16, #tpu.memory_space<vmem>>, vector<32x128xbf16>
    %cst_80 = arith.constant dense<0.000000e+00> : vector<2x128xf32>
    %275 = tpu.matmul %273, %274, %cst_80 {dimension_numbers = #tpu.dot_dimension_numbers<[1], [0], [0], [1], [0, 0, 1, 1], [], []>} : vector<2x32xbf16>, vector<32x128xbf16>, vector<2x128xf32> -> vector<2x128xf32>
    %276 = arith.addf %239, %275 : vector<2x128xf32>
    %277 = vector.extract_strided_slice %15 {offsets = [14, 0], sizes = [2, 32], strides = [1, 1]} : vector<16x128xf32> to vector<2x32xf32>
    %278 = vector.extract_strided_slice %15 {offsets = [14, 32], sizes = [2, 32], strides = [1, 1]} : vector<16x128xf32> to vector<2x32xf32>
    %279 = vector.extract_strided_slice %15 {offsets = [14, 64], sizes = [2, 32], strides = [1, 1]} : vector<16x128xf32> to vector<2x32xf32>
    %280 = vector.extract_strided_slice %15 {offsets = [14, 96], sizes = [2, 32], strides = [1, 1]} : vector<16x128xf32> to vector<2x32xf32>
    %cst_81 = arith.constant dense<0.000000e+00> : vector<2x32xf32>
    %281 = tpu.matmul %273, %17, %cst_81 {dimension_numbers = #tpu.dot_dimension_numbers<[1], [0], [0], [1], [0, 0, 1, 1], [], []>} : vector<2x32xbf16>, vector<32x32xbf16>, vector<2x32xf32> -> vector<2x32xf32>
    %282 = arith.addf %277, %281 : vector<2x32xf32>
    %cst_82 = arith.constant dense<0.000000e+00> : vector<2x32xf32>
    %283 = tpu.matmul %273, %19, %cst_82 {dimension_numbers = #tpu.dot_dimension_numbers<[1], [0], [0], [1], [0, 0, 1, 1], [], []>} : vector<2x32xbf16>, vector<32x32xbf16>, vector<2x32xf32> -> vector<2x32xf32>
    %284 = arith.addf %278, %283 : vector<2x32xf32>
    %cst_83 = arith.constant dense<0.000000e+00> : vector<2x32xf32>
    %285 = tpu.matmul %273, %21, %cst_83 {dimension_numbers = #tpu.dot_dimension_numbers<[1], [0], [0], [1], [0, 0, 1, 1], [], []>} : vector<2x32xbf16>, vector<32x32xbf16>, vector<2x32xf32> -> vector<2x32xf32>
    %286 = arith.addf %279, %285 : vector<2x32xf32>
    %cst_84 = arith.constant dense<0.000000e+00> : vector<2x32xf32>
    %287 = tpu.matmul %273, %23, %cst_84 {dimension_numbers = #tpu.dot_dimension_numbers<[1], [0], [0], [1], [0, 0, 1, 1], [], []>} : vector<2x32xbf16>, vector<32x32xbf16>, vector<2x32xf32> -> vector<2x32xf32>
    %288 = arith.addf %280, %287 : vector<2x32xf32>
    %289 = arith.negf %282 : vector<2x32xf32>
    %290 = math.exp %289 : vector<2x32xf32>
    %cst_85 = arith.constant 1.000000e+00 : f32
    %291 = vector.broadcast %cst_85 : f32 to vector<2x32xf32>
    %292 = arith.addf %291, %290 : vector<2x32xf32>
    %293 = arith.divf %291, %292 : vector<2x32xf32>
    %294 = arith.negf %284 : vector<2x32xf32>
    %295 = math.exp %294 : vector<2x32xf32>
    %cst_86 = arith.constant 1.000000e+00 : f32
    %296 = vector.broadcast %cst_86 : f32 to vector<2x32xf32>
    %297 = arith.addf %296, %295 : vector<2x32xf32>
    %298 = arith.divf %296, %297 : vector<2x32xf32>
    %299 = math.tanh %286 : vector<2x32xf32>
    %300 = arith.negf %288 : vector<2x32xf32>
    %301 = math.exp %300 : vector<2x32xf32>
    %cst_87 = arith.constant 1.000000e+00 : f32
    %302 = vector.broadcast %cst_87 : f32 to vector<2x32xf32>
    %303 = arith.addf %302, %301 : vector<2x32xf32>
    %304 = arith.divf %302, %303 : vector<2x32xf32>
    %305 = arith.mulf %298, %270 : vector<2x32xf32>
    %306 = arith.mulf %293, %299 : vector<2x32xf32>
    %307 = arith.addf %305, %306 : vector<2x32xf32>
    %308 = math.tanh %307 : vector<2x32xf32>
    %309 = arith.mulf %304, %308 : vector<2x32xf32>
    %310 = arith.truncf %309 : vector<2x32xf32> to vector<2x32xbf16>
    %c224 = arith.constant 224 : index
    %c0_88 = arith.constant 0 : index
    %311 = vector.load %arg6[%c224, %c0_88] : memref<256x128xbf16, #tpu.memory_space<vmem>>, vector<32x128xbf16>
    %cst_89 = arith.constant dense<0.000000e+00> : vector<2x128xf32>
    %312 = tpu.matmul %310, %311, %cst_89 {dimension_numbers = #tpu.dot_dimension_numbers<[1], [0], [0], [1], [0, 0, 1, 1], [], []>} : vector<2x32xbf16>, vector<32x128xbf16>, vector<2x128xf32> -> vector<2x128xf32>
    %313 = arith.addf %276, %312 : vector<2x128xf32>
    %c0_90 = arith.constant 0 : index
    %c0_91 = arith.constant 0 : index
    %314 = vector.load %arg7[%c0_90, %c0_91] : memref<1x128xf32, #tpu.memory_space<vmem>>, vector<1x128xf32>
    %315 = vector.broadcast %314 : vector<1x128xf32> to vector<2x128xf32>
    %316 = arith.addf %313, %315 : vector<2x128xf32>
    %317 = tpu.iota {dimensions = array<i32: 1>} : vector<2x128xi32>
    %c4_i32 = arith.constant 4 : i32
    %318 = vector.broadcast %c4_i32 : i32 to vector<2x128xi32>
    %319 = arith.cmpi slt, %317, %318 : vector<2x128xi32>
    %cst_92 = arith.constant -1.000000e+30 : f32
    %320 = vector.broadcast %cst_92 : f32 to vector<2x128xf32>
    %321 = arith.select %319, %316, %320 : vector<2x128xi1>, vector<2x128xf32>
    %cst_93 = arith.constant dense<0xFF800000> : vector<2xf32>
    %322 = vector.multi_reduction <maximumf>, %321, %cst_93 [1] : vector<2x128xf32> to vector<2xf32>
    %323 = vector.shape_cast %322 : vector<2xf32> to vector<2x1xf32>
    %324 = vector.broadcast %323 : vector<2x1xf32> to vector<2x128xf32>
    %325 = arith.subf %321, %324 : vector<2x128xf32>
    %326 = math.exp %325 : vector<2x128xf32>
    %cst_94 = arith.constant 0.000000e+00 : f32
    %327 = vector.broadcast %cst_94 : f32 to vector<2x128xf32>
    %328 = arith.select %319, %326, %327 : vector<2x128xi1>, vector<2x128xf32>
    %cst_95 = arith.constant dense<0.000000e+00> : vector<2xf32>
    %329 = vector.multi_reduction <add>, %328, %cst_95 [1] : vector<2x128xf32> to vector<2xf32>
    %330 = vector.shape_cast %329 : vector<2xf32> to vector<2x1xf32>
    %331 = math.log %330 : vector<2x1xf32>
    %332 = arith.addf %323, %331 : vector<2x1xf32>
    %333 = vector.broadcast %332 : vector<2x1xf32> to vector<2x128xf32>
    %334 = arith.subf %316, %333 : vector<2x128xf32>
    %c0_96 = arith.constant 0 : index
    %c0_97 = arith.constant 0 : index
    %335 = vector.load %arg8[%c0_96, %c0_97] : memref<2x128xf32, #tpu.memory_space<vmem>>, vector<2x128xf32>
    tpu.vector_store %arg8[%c0_96, %c0_97], %334 {strides = array<i32>} : memref<2x128xf32, #tpu.memory_space<vmem>>, vector<2x128xf32>,
    return
  }
  func.func @transform_0(%arg0: i32) -> (i32, i32) {
    %c0_i32 = arith.constant 0 : i32
    %c0_i32_0 = arith.constant 0 : i32
    %c0_i32_1 = arith.constant 0 : i32
    return %c0_i32, %c0_i32_0 : i32, i32
  }
  func.func @transform_1(%arg0: i32) -> (i32, i32) {
    %c0_i32 = arith.constant 0 : i32
    %c0_i32_0 = arith.constant 0 : i32
    %c0_i32_1 = arith.constant 0 : i32
    return %c0_i32, %c0_i32_0 : i32, i32
  }
  func.func @transform_2(%arg0: i32) -> (i32, i32) {
    %c0_i32 = arith.constant 0 : i32
    %c0_i32_0 = arith.constant 0 : i32
    %c0_i32_1 = arith.constant 0 : i32
    return %c0_i32, %c0_i32_0 : i32, i32
  }
  func.func @transform_3(%arg0: i32) -> (i32, i32, i32) {
    %c0_i32 = arith.constant 0 : i32
    %c0_i32_0 = arith.constant 0 : i32
    %c0_i32_1 = arith.constant 0 : i32
    %c0_i32_2 = arith.constant 0 : i32
    return %c0_i32, %c0_i32_0, %c0_i32_1 : i32, i32, i32
  }
  func.func @transform_4(%arg0: i32) -> (i32, i32) {
    %c0_i32 = arith.constant 0 : i32
    %c0_i32_0 = arith.constant 0 : i32
    %c0_i32_1 = arith.constant 0 : i32
    return %c0_i32, %c0_i32_0 : i32, i32
  }
  func.func @transform_5(%arg0: i32) -> (i32, i32) {
    %c0_i32 = arith.constant 0 : i32
    %c0_i32_0 = arith.constant 0 : i32
    %c0_i32_1 = arith.constant 0 : i32
    return %c0_i32, %c0_i32_0 : i32, i32
  }
  func.func @transform_6(%arg0: i32) -> (i32, i32) {
    %c0_i32 = arith.constant 0 : i32
    %c0_i32_0 = arith.constant 0 : i32
    %c0_i32_1 = arith.constant 0 : i32
    return %c0_i32, %c0_i32_0 : i32, i32
  }
  func.func @transform_7(%arg0: i32) -> (i32, i32) {
    %c0_i32 = arith.constant 0 : i32
    %c0_i32_0 = arith.constant 0 : i32
    %c0_i32_1 = arith.constant 0 : i32
    return %c0_i32, %c0_i32_0 : i32, i32
  }
}

</mosaic_0001>

<bundles_post_ra>
// kernel: single_lstm_forward.1
= control target key start
LH: loop header
LB: loop body
LE: loop exit
PB: predicated region body
PF: predicated region fallthrough
CT: control target
= control target key end

     0   :  { %12 = vsyncpa [#allocation3], 0  ;;  %s3692_s0 = inlined_call_operand.vmem [shape: s32[16,1], index: 0, kind: input, shape index: {}]   ;;  %s3693_s1 = inlined_call_operand.vmem [shape: bf16[50,16], index: 1, kind: input, shape index: {}]   ;;  %s3694_s2 = inlined_call_operand.vmem [shape: bf16[16,128], index: 2, kind: input, shape index: {}]   ;;  %s3695_s3 = inlined_call_operand.vmem [shape: bf16[4,32,32], index: 3, kind: input, shape index: {}]   ;;  %s3696_s4 = inlined_call_operand.vmem [shape: f32[1,128], index: 4, kind: input, shape index: {}]   ;;  %s3697_s5 = inlined_call_operand.hbm [shape: bf16[256,128], index: 5, kind: input, shape index: {}]   ;;  %s3698_s6 = inlined_call_operand.vmem [shape: f32[1,128], index: 6, kind: input, shape index: {}]   ;;  %s3699_s7 = inlined_call_operand.hbm [shape: f32[2,128], index: 7, kind: output, shape index: {}]  }
   0x1   :  { %13 = vsyncpa [#allocation4], 0  ;;  %s3128_s24 = smov [#allocation2]   ;;  %s3080_s28 = scalar_lea.hbm %s3697_s5, 2048 }
   0x2   :  { %s29_s25 = sshll.u32 %s3128_s24, 4  ;;  %p3081_p0 = scmp.ne.s32.totalorder %s3697_s5, %s3080_s28  ;;  %s30_s25 = int_to_ptr.vmem [resolvable:$true] %s29_s25 }
   0x3   :  { %p3084_p1 = scmp.lt.u32.totalorder %s3080_s28, %s3697_s5 }
   0x5   :  { %p3086_p2 = pnand %p3084_p1, %p3081_p0 }
   0x7   :  { %3089 = shalt.err (!%p3086_p2)
}
   0x8   :  { %s3090_s10 = scalar_lea.vmem %s30_s25, 2048  ;;  %p3095_p4 = scmp.lt.s32.totalorder %s30_s25, %s30_s25 }
   0x9   :  { %p3091_p3 = scmp.ne.s32.totalorder %s30_s25, %s3090_s10  ;;  %p3096_p5 = scmp.lt.s32.totalorder %s3090_s10, %s3090_s10 }
   0xb   :  { %p3097_p6 = por %p3096_p5, %p3095_p4 }
   0xd   :  { %p3098_p7 = pnand %p3097_p6, %p3091_p3 }
   0xf   :  { %3101 = shalt.err (!%p3098_p7)
}
  0x10   :  { %s3129_s11 = smov 64   ;;  %s3130_s12 = smov 4  }
  0x11   :  { %35 = dma.hbm_to_vmem [thread:$0]  %s3697_s5, 2048, %s30_s25, [#allocation3], %s3129_s11, %s3129_s11, %s3130_s12  }
  0x12   :  { %3124 = dma.done.wait [#allocation3], 2048  }
  0x13   :  { %3125 = vsyncadd [#allocation3], 4294965248  ;;  %v3131_v0 = vmov 0   ;;  %v3132_v1 = vmov 0.0   ;;  %v42_v2 = vld [vmem:[%s3692_s0] sm:$0xff]  ;;  %v43_v4 = vld [vmem:[%s3692_s0 + $0x8] sm:$0xff]  ;;  %v44_v9 = vlaneseq }
  0x14   :  { %2918 = vset.pattern.permute.xlu0 %v3131_v0  ;;  %2603 = vmatprep.subr.bf16.mxu0 %v3132_v1  ;;  %v2919_v3 = vld [vmem:[%s3693_s1] sm:$0xff]   ;;  %v2920_v5 = vld [vmem:[%s3693_s1 + $0x8] sm:$0xff]   ;;  %v2922_v6 = vld [vmem:[%s3693_s1 + $0x18] ss:$0 sps:$4 sm:$0x11]   ;;  %vm89_vm0 = vcmask 1040384  }
  0x15   :  { %2615 = vmatprep.subr.bf16.mxu1 %v3132_v1  ;;  %47 = vperm.xlu0 %2918, %v42_v2   ;;  %v2921_v7 = vld [vmem:[%s3693_s1 + $0x10] sm:$0xff]   ;;  %v91_v8 = vsel %vm89_vm0, %v2922_v6, 0  ;;  %vm3133_vm1 = vmmov 0   ;;  %v3219_v10 = vand.u32 127, %v44_v9  ;;  %vm85_vm4 = vcmask 408576   ;;  %v2923_v16 = vld [vmem:[%s3694_s2] sm:$0xff]  }
  0x16   :  { %2604 = vmatpush3.bf16.msra.mxu0 %v2919_v3  ;;  %2611 = vmatprep.mubr.msk.bf16.mxu0 %vm3133_vm1, %v3132_v1  ;;  %vm150_vm5 = vcmask 130048   ;;  %v2390_v22 = vld [vmem:[%s3696_s4] ss:$0 sm:$0xff]  ;;  %s3134_s2 = smov 32   ;;  %v3262_v41 = vld [vmem:[%s3695_s3 + $0x28] sm:$0xff]   ;;  %vm258_vm6 = vcmask 261120  }
  0x17   :  { %2605 = vmatprep.subr.bf16.mxu0 %v3132_v1  ;;  %2617 = vmatprep.mubr.msk.bf16.mxu1 %vm3133_vm1, %v3132_v1  ;;  %v3250_v39 = vld [vmem:[%s3695_s3 + $0x20] sm:$0xff]   ;;  %v3267_v42 = vld [vmem:[%s3695_s3 + $0x8] sm:$0xff]   ;;  %v3280_v47 = vld [vmem:[%s3695_s3 + $0x10] sm:$0xff]   ;;  %s3135_s20 = smov 96   ;;  %vm2352_vm7 = vcmp.lt.s32.totalorder %v3219_v10, 4  ;;  %vm2354_vm8 = vcmask 1041408  }
  0x18   :  { %2616 = vmatpush3.bf16.msra.mxu1 %v2923_v16  ;;  %v3255_v40 = vld [vmem:[%s3695_s3] sm:$0xff]   ;;  %v3288_v49 = vld [vmem:[%s3695_s3 + $0x18] sm:$0xff]   ;;  %v3299_v50 = vld [vmem:[%s3695_s3 + $0x30] sm:$0xff]  }
  0x19   :  { %50 = vperm.xlu0 %2918, %v43_v4   ;;  %2621 = vmatprep.subr.bf16.mxu1 %v3132_v1  ;;  %v3307_v51 = vld [vmem:[%s3695_s3 + $0x38] sm:$0xff]   ;;  %v2932_v52 = vld [vmem:[#allocation2] sm:$0xff]   ;;  %v2933_v53 = vld [vmem:[#allocation2 + $0x8] sm:$0xff]  }
  0x1a   :  { %2606 = vmatpush3.bf16.msra.mxu0 %v2920_v5 }
  0x1b   :  { %2607 = vmatprep.subr.bf16.mxu0 %v3132_v1 }
  0x1e   :  { %2608 = vmatpush3.bf16.msra.mxu0 %v2921_v7 }
  0x1f   :  { %2609 = vmatprep.subr.bf16.mxu0 %v3132_v1 }
  0x22   :  { %2610 = vmatpush3.bf16.msra.mxu0 %v91_v8 }
  0x23   :  { %2637 = vmatprep.subr.bf16.mxu0 %v3132_v1 }
  0x94   :  { %v48_v11 = vpop.permute.xlu0 %47 }
  0x95   :  { %vm52_vm2 = vcmp.eq.s32.totalorder %v48_v11, %v3219_v10 }
  0x96   :  { %v54_v13 = vsel %vm52_vm2, 1.0, %v3132_v1 }
  0x98   :  { %v51_v12 = vpop.permute.xlu0 %50 }
  0x99   :  { %vm53_vm3 = vcmp.eq.s32.totalorder %v51_v12, %v3219_v10 }
  0x9a   :  { %v55_v14 = vsel %vm53_vm3, 1.0, %v3132_v1 }
  0x9b   :  { %v56_v15 = vpack.c.bf16 %v55_v14, %v54_v13 }
  0x9d   :  { %2612 = vmatmul.mubr.msk.bf16.vlgmr.msra.gmra.mrb[0].mxu0 %vm85_vm4, %v56_v15 }
  0x9e   :  { %2641 = vmatprep.mubr.msk.bf16.mxu0 %vm3133_vm1, %v3132_v1  ;;  %2638 = vmatpush3.bf16.msra.mxu0 %v3250_v39 }
  0x9f   :  { %2639 = vmatprep.subr.bf16.mxu0 %v3132_v1 }
  0xa2   :  { %2640 = vmatpush3.bf16.msra.mxu0 %v3262_v41 }
  0xa3   :  { %2653 = vmatprep.subr.bf16.mxu0 %v3132_v1 }
 0x170   :  { %v127_v17 = vpop.f32.mrb[0].mxu0 }
 0x171   :  { %v2613_v18 = vpop.f32.mrb[1].mxu0 }
 0x172   :  { %v130_v19 = vpop.f32.mrb[2].mxu0 }
 0x173   :  { %v134_v20 = vpack.c.bf16 %v130_v19, %v127_v17  ;;  %v2614_v21 = vpop.f32.mrb[3].mxu0 }
 0x175   :  { %2618 = vmatmul.mubr.msk.bf16.vlgmr.msra.gmra.mrb[0].mxu1 %vm150_vm5, %v134_v20 }
 0x176   :  { %2625 = vmatprep.mubr.msk.bf16.mxu1 %vm3133_vm1, %v3132_v1  ;;  %2622 = vmatpush3.bf16.msra.mxu1 %v3255_v40 }
 0x177   :  { %2623 = vmatprep.subr.bf16.mxu1 %v3132_v1 }
 0x17a   :  { %2624 = vmatpush3.bf16.msra.mxu1 %v3267_v42 }
 0x17b   :  { %2629 = vmatprep.subr.bf16.mxu1 %v3132_v1 }
 0x248   :  { %v188_v23 = vpop.f32.mrb[0].mxu1 }
 0x249   :  { %v3236_v24 = vadd.f32 %v2390_v22, %v188_v23  ;;  %v2619_v25 = vpop.f32.mrb[1].mxu1 }
 0x24a   :  { %v191_v26 = vpop.f32.mrb[2].mxu1 }
 0x24b   :  { %v3238_v27 = vadd.f32 %v2390_v22, %v191_v26  ;;  %v2620_v28 = vpop.f32.mrb[3].mxu1  ;;  %2948 = vtanh.f32 %v3236_v24  ;;  %v2405_v30 = vmul.f32 -1.442695, %v3236_v24 }
 0x24d   :  { %2950 = vpow2.f32 %v2405_v30 }
 0x255   :  { %v2949_v29 = vpop.eup %2948 }
 0x256   :  { %223 = vrot.lane.b32.xlu1 %v2949_v29, %s3129_s11 }
 0x257   :  { %v2951_v31 = vpop.eup %2950 }
 0x258   :  { %v217_v32 = vadd.f32 1.0, %v2951_v31 }
 0x25a   :  { %2952 = vrcp.f32 %v217_v32 }
 0x264   :  { %v2953_v33 = vpop.eup %2952 }
 0x265   :  { %v221_v36 = vmul.f32 0.0, %v2953_v33 }
 0x2c8   :  { %v224_v34 = vpop.permute.xlu1 %223 }
 0x2c9   :  { %v226_v35 = vmul.f32 %v2953_v33, %v224_v34 }
 0x2cb   :  { %228 = vrot.lane.b32.xlu1 %v226_v35, %s3134_s2 }
 0x33d   :  { %v229_v37 = vpop.permute.xlu1 %228 }
 0x33e   :  { %v3244_v38 = vadd.f32 %v229_v37, %v221_v36 }
 0x340   :  { %2954 = vtanh.f32 %v3244_v38  ;;  %v500_v34 = vrot.slane %v3244_v38, 6 }
 0x34a   :  { %v2955_v43 = vpop.eup %2954 }
 0x34b   :  { %234 = vrot.lane.b32.xlu0 %v2955_v43, %s3129_s11  ;;  %v2934_v43 = vld [vmem:[#allocation2 + $0x10] sm:$0xff]  }
 0x3bd   :  { %v235_v44 = vpop.permute.xlu0 %234 }
 0x3be   :  { %v237_v45 = vmul.f32 %v2953_v33, %v235_v44  ;;  %v2935_v44 = vld [vmem:[#allocation2 + $0x18] sm:$0xff]  }
 0x3c0   :  { %v238_v46 = vpack.c.bf16 %v237_v45, %v237_v45 }
 0x3c2   :  { %244 = vrot.lane.b32.xlu1 %v238_v46, %s3134_s2 }
 0x434   :  { %v245_v48 = vpop.permute.xlu1 %244 }
 0x435   :  { %2626 = vmatmul.mubr.msk.bf16.vlgmr.msra.gmra.mrb[4].mxu1 %vm258_vm6, %v245_v48  ;;  %2642 = vmatmul.mubr.msk.bf16.vlgmr.msra.gmra.mrb[4].mxu0 %vm258_vm6, %v245_v48 }
 0x436   :  { %2630 = vmatpush3.bf16.msra.mxu1 %v3280_v47  ;;  %2633 = vmatprep.mubr.msk.bf16.mxu1 %vm3133_vm1, %v3132_v1 }
 0x437   :  { %2631 = vmatprep.subr.bf16.mxu1 %v3132_v1  ;;  %2657 = vmatprep.mubr.msk.bf16.mxu0 %vm3133_vm1, %v3132_v1 }
 0x438   :  { %2654 = vmatpush3.bf16.msra.mxu0 %v2934_v43 }
 0x439   :  { %2655 = vmatprep.subr.bf16.mxu0 %v3132_v1 }
 0x43a   :  { %2632 = vmatpush3.bf16.msra.mxu1 %v3288_v49 }
 0x43b   :  { %2645 = vmatprep.subr.bf16.mxu1 %v3132_v1 }
 0x43c   :  { %2656 = vmatpush3.bf16.msra.mxu0 %v2935_v44 }
 0x43d   :  { %2634 = vmatmul.mubr.msk.bf16.vlgmr.msra.gmra.mrb[8].mxu1 %vm258_vm6, %v245_v48  ;;  %2669 = vmatprep.subr.bf16.mxu0 %v3132_v1 }
 0x43e   :  { %2646 = vmatpush3.bf16.msra.mxu1 %v3299_v50  ;;  %2649 = vmatprep.mubr.msk.bf16.mxu1 %vm3133_vm1, %v3132_v1 }
 0x43f   :  { %2647 = vmatprep.subr.bf16.mxu1 %v3132_v1 }
 0x442   :  { %2648 = vmatpush3.bf16.msra.mxu1 %v3307_v51 }
 0x443   :  { %2661 = vmatprep.subr.bf16.mxu1 %v3132_v1 }
 0x445   :  { %2650 = vmatmul.mubr.msk.bf16.vlgmr.msra.gmra.mrb[12].mxu1 %vm258_vm6, %v245_v48 }
 0x446   :  { %2662 = vmatpush3.bf16.msra.mxu1 %v2932_v52  ;;  %2665 = vmatprep.mubr.msk.bf16.mxu1 %vm3133_vm1, %v3132_v1 }
 0x447   :  { %2663 = vmatprep.subr.bf16.mxu1 %v3132_v1 }
 0x44a   :  { %2664 = vmatpush3.bf16.msra.mxu1 %v2933_v53 }
 0x44b   :  { %2677 = vmatprep.subr.bf16.mxu1 %v3132_v1 }
 0x44d   :  { %2666 = vmatmul.mubr.msk.bf16.vlgmr.msra.gmra.mrb[16].mxu1 %vm258_vm6, %v245_v48 }
 0x44e   :  { %2678 = vmatpush3.bf16.msra.mxu1 %v3280_v47  ;;  %2681 = vmatprep.mubr.msk.bf16.mxu1 %vm3133_vm1, %v3132_v1 }
 0x44f   :  { %2679 = vmatprep.subr.bf16.mxu1 %v3132_v1 }
 0x452   :  { %2680 = vmatpush3.bf16.msra.mxu1 %v3288_v49 }
 0x453   :  { %2693 = vmatprep.subr.bf16.mxu1 %v3132_v1 }
 0x508   :  { %v296_v54 = vpop.f32.mrb[4].mxu1  ;;  %v410_v55 = vpop.f32.mrb[4].mxu0 }
 0x509   :  { %v417_v56 = vrot.slane %v410_v55, 6  ;;  %v2627_v57 = vpop.f32.mrb[5].mxu1  ;;  %v2643_v58 = vpop.f32.mrb[5].mxu0  ;;  %v303_v18 = vrot.slane %v296_v54, 6 }
 0x50a   :  { %v299_v59 = vpop.f32.mrb[6].mxu1  ;;  %v413_v60 = vpop.f32.mrb[6].mxu0 }
 0x50b   :  { %v2628_v61 = vpop.f32.mrb[7].mxu1  ;;  %418 = vrot.lane.b32.xlu0 %v417_v56, %s3129_s11  ;;  %v2644_v62 = vpop.f32.mrb[7].mxu0  ;;  %v305_v19 = vadd.f32 %v303_v18, %v3236_v24 }
 0x50d   :  { %v2418_v20 = vmul.f32 -1.442695, %v305_v19 }
 0x510   :  { %v352_v63 = vpop.f32.mrb[8].mxu1 }
 0x511   :  { %v359_v0 = vrot.slane %v352_v63, 6  ;;  %v2635_v2 = vpop.f32.mrb[9].mxu1 }
 0x512   :  { %v355_v3 = vpop.f32.mrb[10].mxu1 }
 0x513   :  { %v2636_v4 = vpop.f32.mrb[11].mxu1  ;;  %360 = vrot.lane.b32.xlu0 %v359_v0, %s3134_s2 }
 0x518   :  { %v468_v5 = vpop.f32.mrb[12].mxu1 }
 0x519   :  { %v475_v6 = vrot.slane %v468_v5, 6  ;;  %v2651_v7 = vpop.f32.mrb[13].mxu1 }
 0x51a   :  { %v471_v8 = vpop.f32.mrb[14].mxu1 }
 0x51b   :  { %v2652_v9 = vpop.f32.mrb[15].mxu1  ;;  %476 = vrot.lane.b32.xlu0 %v475_v6, %s3135_s20 }
 0x520   :  { %v3329_v11 = vpop.f32.mrb[16].mxu1 }
 0x521   :  { %v2667_v12 = vpop.f32.mrb[17].mxu1 }
 0x522   :  { %v632_v13 = vpop.f32.mrb[18].mxu1 }
 0x523   :  { %v2668_v14 = vpop.f32.mrb[19].mxu1 }
 0x57d   :  { %v419_v15 = vpop.permute.xlu0 %418 }
 0x57e   :  { %v421_v16 = vadd.f32 %v419_v15, %v3236_v24 }
 0x580   :  { %2956 = vtanh.f32 %v421_v16 }
 0x581   :  { %2958 = vpow2.f32 %v2418_v20 }
 0x585   :  { %v361_v28 = vpop.permute.xlu0 %360 }
 0x586   :  { %v363_v29 = vadd.f32 %v361_v28, %v3236_v24 }
 0x588   :  { %v2419_v30 = vmul.f32 -1.442695, %v363_v29 }
 0x58a   :  { %v2957_v17 = vpop.eup %2956 }
 0x58b   :  { %504 = vrot.lane.b32.xlu1 %v2957_v17, %s3129_s11  ;;  %v2959_v21 = vpop.eup %2958 }
 0x58c   :  { %v483_v22 = vadd.f32 1.0, %v2959_v21 }
 0x58d   :  { %v477_v46 = vpop.permute.xlu0 %476 }
 0x58e   :  { %2960 = vrcp.f32 %v483_v22  ;;  %v479_v38 = vadd.f32 %v477_v46, %v3236_v24 }
 0x58f   :  { %2962 = vpow2.f32 %v2419_v30 }
 0x590   :  { %v2420_v48 = vmul.f32 -1.442695, %v479_v38 }
 0x598   :  { %v2961_v23 = vpop.eup %2960 }
 0x599   :  { %v2963_v31 = vpop.eup %2962 }
 0x59a   :  { %v489_v32 = vadd.f32 1.0, %v2963_v31 }
 0x59c   :  { %2964 = vrcp.f32 %v489_v32 }
 0x5a6   :  { %v2965_v33 = vpop.eup %2964 }
 0x5a7   :  { %v502_v35 = vmul.f32 %v2965_v33, %v500_v34 }
 0x5fd   :  { %v505_v25 = vpop.permute.xlu1 %504 }
 0x5fe   :  { %v507_v26 = vmul.f32 %v2961_v23, %v505_v25 }
 0x600   :  { %509 = vrot.lane.b32.xlu1 %v507_v26, %s3134_s2 }
 0x672   :  { %v510_v36 = vpop.permute.xlu1 %509 }
 0x673   :  { %v3337_v37 = vadd.f32 %v510_v36, %v502_v35 }
 0x675   :  { %2966 = vtanh.f32 %v3337_v37  ;;  %v837_v38 = vrot.slane %v3337_v37, 6 }
 0x676   :  { %2968 = vpow2.f32 %v2420_v48 }
 0x67f   :  { %v2967_v45 = vpop.eup %2966 }
 0x680   :  { %515 = vrot.lane.b32.xlu1 %v2967_v45, %s3129_s11  ;;  %v2969_v52 = vpop.eup %2968 }
 0x681   :  { %v496_v53 = vadd.f32 1.0, %v2969_v52 }
 0x683   :  { %2970 = vrcp.f32 %v496_v53 }
 0x68d   :  { %v2971_v54 = vpop.eup %2970 }
 0x6f2   :  { %v516_v55 = vpop.permute.xlu1 %515 }
 0x6f3   :  { %v518_v56 = vmul.f32 %v2971_v54, %v516_v55  ;;  %v2936_v54 = vld [vmem:[#allocation2 + $0x20] sm:$0xff]   ;;  %v2937_v55 = vld [vmem:[#allocation2 + $0x28] sm:$0xff]  }
 0x6f5   :  { %v519_v57 = vpack.c.bf16 %v518_v56, %v518_v56 }
 0x6f7   :  { %v525_v58 = vrot.slane %v519_v57, 1 }
 0x6f9   :  { %526 = vrot.lane.b32.xlu0 %v525_v58, %s3134_s2 }
 0x76b   :  { %v527_v59 = vpop.permute.xlu0 %526 }
 0x76c   :  { %2658 = vmatmul.mubr.msk.bf16.vlgmr.msra.gmra.mrb[8].mxu0 %vm258_vm6, %v527_v59  ;;  %2682 = vmatmul.mubr.msk.bf16.vlgmr.msra.gmra.mrb[20].mxu1 %vm258_vm6, %v527_v59 }
 0x76d   :  { %2670 = vmatpush3.bf16.msra.mxu0 %v3255_v40  ;;  %2694 = vmatpush3.bf16.msra.mxu1 %v3299_v50 }
 0x76e   :  { %2671 = vmatprep.subr.bf16.mxu0 %v3132_v1  ;;  %2695 = vmatprep.subr.bf16.mxu1 %v3132_v1 }
 0x76f   :  { %2673 = vmatprep.mubr.msk.bf16.mxu0 %vm3133_vm1, %v3132_v1  ;;  %2697 = vmatprep.mubr.msk.bf16.mxu1 %vm3133_vm1, %v3132_v1 }
 0x771   :  { %2672 = vmatpush3.bf16.msra.mxu0 %v3267_v42  ;;  %2696 = vmatpush3.bf16.msra.mxu1 %v3307_v51 }
 0x772   :  { %2685 = vmatprep.subr.bf16.mxu0 %v3132_v1  ;;  %2709 = vmatprep.subr.bf16.mxu1 %v3132_v1 }
 0x774   :  { %2674 = vmatmul.mubr.msk.bf16.vlgmr.msra.gmra.mrb[12].mxu0 %vm258_vm6, %v527_v59  ;;  %2698 = vmatmul.mubr.msk.bf16.vlgmr.msra.gmra.mrb[24].mxu1 %vm258_vm6, %v527_v59 }
 0x775   :  { %2686 = vmatpush3.bf16.msra.mxu0 %v3250_v39  ;;  %2689 = vmatprep.mubr.msk.bf16.mxu0 %vm3133_vm1, %v3132_v1 }
 0x776   :  { %2687 = vmatprep.subr.bf16.mxu0 %v3132_v1  ;;  %2710 = vmatpush3.bf16.msra.mxu1 %v3255_v40 }
 0x777   :  { %2711 = vmatprep.subr.bf16.mxu1 %v3132_v1  ;;  %2713 = vmatprep.mubr.msk.bf16.mxu1 %vm3133_vm1, %v3132_v1 }
 0x779   :  { %2688 = vmatpush3.bf16.msra.mxu0 %v3262_v41 }
 0x77a   :  { %2701 = vmatprep.subr.bf16.mxu0 %v3132_v1  ;;  %2712 = vmatpush3.bf16.msra.mxu1 %v3267_v42 }
 0x77b   :  { %2725 = vmatprep.subr.bf16.mxu1 %v3132_v1 }
 0x77c   :  { %2690 = vmatmul.mubr.msk.bf16.vlgmr.msra.gmra.mrb[16].mxu0 %vm258_vm6, %v527_v59 }
 0x77d   :  { %2705 = vmatprep.mubr.msk.bf16.mxu0 %vm3133_vm1, %v3132_v1  ;;  %2702 = vmatpush3.bf16.msra.mxu0 %v2936_v54 }
 0x77e   :  { %2703 = vmatprep.subr.bf16.mxu0 %v3132_v1 }
 0x781   :  { %2704 = vmatpush3.bf16.msra.mxu0 %v2937_v55 }
 0x782   :  { %2717 = vmatprep.subr.bf16.mxu0 %v3132_v1 }
 0x83f   :  { %v577_v60 = vpop.f32.mrb[8].mxu0  ;;  %v713_v61 = vpop.f32.mrb[20].mxu1 }
 0x840   :  { %v3377_v62 = vadd.f32 %v3329_v11, %v577_v60  ;;  %v2659_v63 = vpop.f32.mrb[9].mxu0  ;;  %v2683_v0 = vpop.f32.mrb[21].mxu1  ;;  %v720_v20 = vrot.slane %v713_v61, 4 }
 0x841   :  { %v580_v2 = vpop.f32.mrb[10].mxu0  ;;  %v716_v3 = vpop.f32.mrb[22].mxu1 }
 0x842   :  { %v2660_v4 = vpop.f32.mrb[11].mxu0  ;;  %v2684_v5 = vpop.f32.mrb[23].mxu1 }
 0x847   :  { %v669_v6 = vpop.f32.mrb[12].mxu0  ;;  %v805_v7 = vpop.f32.mrb[24].mxu1 }
 0x848   :  { %v2675_v8 = vpop.f32.mrb[13].mxu0  ;;  %v2699_v9 = vpop.f32.mrb[25].mxu1  ;;  %v812_v21 = vrot.slane %v805_v7, 4  ;;  %v676_v26 = vrot.slane %v669_v6, 4 }
 0x849   :  { %v672_v12 = vpop.f32.mrb[14].mxu0  ;;  %v808_v13 = vpop.f32.mrb[26].mxu1 }
 0x84a   :  { %v2676_v14 = vpop.f32.mrb[15].mxu0  ;;  %v2700_v15 = vpop.f32.mrb[27].mxu1  ;;  %v678_v28 = vadd.f32 %v676_v26, %v3236_v24 }
 0x84c   :  { %v2431_v29 = vmul.f32 -1.442695, %v678_v28 }
 0x84f   :  { %v759_v16 = vpop.f32.mrb[16].mxu0 }
 0x850   :  { %v766_v17 = vrot.slane %v759_v16, 4  ;;  %v2691_v18 = vpop.f32.mrb[17].mxu0 }
 0x851   :  { %v762_v19 = vpop.f32.mrb[18].mxu0 }
 0x852   :  { %767 = vrot.lane.b32.xlu1 %v766_v17, %s3129_s11  ;;  %v2692_v11 = vpop.f32.mrb[19].mxu0 }
 0x856   :  { %721 = vrot.lane.b32.xlu1 %v720_v20, %s3134_s2 }
 0x85a   :  { %813 = vrot.lane.b32.xlu1 %v812_v21, %s3135_s20 }
 0x8c4   :  { %v768_v22 = vpop.permute.xlu1 %767 }
 0x8c5   :  { %v770_v23 = vadd.f32 %v768_v22, %v3236_v24 }
 0x8c7   :  { %2972 = vtanh.f32 %v770_v23 }
 0x8c8   :  { %2974 = vpow2.f32 %v2431_v29  ;;  %v722_v35 = vpop.permute.xlu1 %721 }
 0x8c9   :  { %v724_v36 = vadd.f32 %v722_v35, %v3236_v24 }
 0x8cb   :  { %v2432_v43 = vmul.f32 -1.442695, %v724_v36 }
 0x8cc   :  { %v814_v57 = vpop.permute.xlu1 %813 }
 0x8cd   :  { %v816_v37 = vadd.f32 %v814_v57, %v3236_v24 }
 0x8cf   :  { %v2433_v58 = vmul.f32 -1.442695, %v816_v37 }
 0x8d1   :  { %v2973_v25 = vpop.eup %2972 }
 0x8d2   :  { %841 = vrot.lane.b32.xlu0 %v2973_v25, %s3129_s11  ;;  %v2975_v30 = vpop.eup %2974 }
 0x8d3   :  { %v820_v31 = vadd.f32 1.0, %v2975_v30 }
 0x8d5   :  { %2976 = vrcp.f32 %v820_v31 }
 0x8d6   :  { %2978 = vpow2.f32 %v2432_v43 }
 0x8df   :  { %v2977_v32 = vpop.eup %2976 }
 0x8e0   :  { %v2979_v44 = vpop.eup %2978 }
 0x8e1   :  { %v826_v45 = vadd.f32 1.0, %v2979_v44 }
 0x8e3   :  { %2980 = vrcp.f32 %v826_v45 }
 0x8ed   :  { %v2981_v46 = vpop.eup %2980 }
 0x8ee   :  { %v839_v48 = vmul.f32 %v2981_v46, %v837_v38 }
 0x944   :  { %v842_v33 = vpop.permute.xlu0 %841 }
 0x945   :  { %v844_v34 = vmul.f32 %v2977_v32, %v842_v33 }
 0x947   :  { %846 = vrot.lane.b32.xlu0 %v844_v34, %s3134_s2 }
 0x9b9   :  { %v847_v52 = vpop.permute.xlu0 %846 }
 0x9ba   :  { %v3388_v53 = vadd.f32 %v847_v52, %v839_v48 }
 0x9bc   :  { %2982 = vtanh.f32 %v3388_v53  ;;  %v1123_v37 = vrot.slane %v3388_v53, 6 }
 0x9bd   :  { %2984 = vpow2.f32 %v2433_v58 }
 0x9c6   :  { %v2983_v56 = vpop.eup %2982 }
 0x9c7   :  { %852 = vrot.lane.b32.xlu0 %v2983_v56, %s3129_s11  ;;  %v2985_v59 = vpop.eup %2984 }
 0x9c8   :  { %v833_v60 = vadd.f32 1.0, %v2985_v59 }
 0x9ca   :  { %2986 = vrcp.f32 %v833_v60 }
 0x9d4   :  { %v2987_v61 = vpop.eup %2986 }
 0xa39   :  { %v853_v63 = vpop.permute.xlu0 %852 }
 0xa3a   :  { %v855_v0 = vmul.f32 %v2987_v61, %v853_v63  ;;  %v2938_v61 = vld [vmem:[#allocation2 + $0x30] sm:$0xff]   ;;  %v2939_v63 = vld [vmem:[#allocation2 + $0x38] sm:$0xff]  }
 0xa3c   :  { %v856_v2 = vpack.c.bf16 %v855_v0, %v855_v0 }
 0xa3e   :  { %v862_v3 = vrot.slane %v856_v2, 2 }
 0xa40   :  { %863 = vrot.lane.b32.xlu1 %v862_v3, %s3134_s2 }
 0xab2   :  { %v864_v4 = vpop.permute.xlu1 %863 }
 0xab3   :  { %2706 = vmatmul.mubr.msk.bf16.vlgmr.msra.gmra.mrb[20].mxu0 %vm258_vm6, %v864_v4  ;;  %2714 = vmatmul.mubr.msk.bf16.vlgmr.msra.gmra.mrb[28].mxu1 %vm258_vm6, %v864_v4 }
 0xab4   :  { %2726 = vmatpush3.bf16.msra.mxu1 %v3250_v39  ;;  %2718 = vmatpush3.bf16.msra.mxu0 %v3280_v47 }
 0xab5   :  { %2727 = vmatprep.subr.bf16.mxu1 %v3132_v1  ;;  %2719 = vmatprep.subr.bf16.mxu0 %v3132_v1 }
 0xab6   :  { %2721 = vmatprep.mubr.msk.bf16.mxu0 %vm3133_vm1, %v3132_v1  ;;  %2729 = vmatprep.mubr.msk.bf16.mxu1 %vm3133_vm1, %v3132_v1 }
 0xab8   :  { %2728 = vmatpush3.bf16.msra.mxu1 %v3262_v41  ;;  %2720 = vmatpush3.bf16.msra.mxu0 %v3288_v49 }
 0xab9   :  { %2733 = vmatprep.subr.bf16.mxu0 %v3132_v1  ;;  %2741 = vmatprep.subr.bf16.mxu1 %v3132_v1 }
 0xabb   :  { %2722 = vmatmul.mubr.msk.bf16.vlgmr.msra.gmra.mrb[24].mxu0 %vm258_vm6, %v864_v4  ;;  %2730 = vmatmul.mubr.msk.bf16.vlgmr.msra.gmra.mrb[32].mxu1 %vm258_vm6, %v864_v4 }
 0xabc   :  { %2734 = vmatpush3.bf16.msra.mxu0 %v3299_v50  ;;  %2737 = vmatprep.mubr.msk.bf16.mxu0 %vm3133_vm1, %v3132_v1 }
 0xabd   :  { %2735 = vmatprep.subr.bf16.mxu0 %v3132_v1  ;;  %2745 = vmatprep.mubr.msk.bf16.mxu1 %vm3133_vm1, %v3132_v1 }
 0xabe   :  { %2742 = vmatpush3.bf16.msra.mxu1 %v2938_v61 }
 0xabf   :  { %2743 = vmatprep.subr.bf16.mxu1 %v3132_v1 }
 0xac0   :  { %2736 = vmatpush3.bf16.msra.mxu0 %v3307_v51 }
 0xac1   :  { %2749 = vmatprep.subr.bf16.mxu0 %v3132_v1 }
 0xac2   :  { %2744 = vmatpush3.bf16.msra.mxu1 %v2939_v63 }
 0xac3   :  { %2738 = vmatmul.mubr.msk.bf16.vlgmr.msra.gmra.mrb[28].mxu0 %vm258_vm6, %v864_v4  ;;  %2757 = vmatprep.subr.bf16.mxu1 %v3132_v1 }
 0xac4   :  { %2750 = vmatpush3.bf16.msra.mxu0 %v3255_v40  ;;  %2753 = vmatprep.mubr.msk.bf16.mxu0 %vm3133_vm1, %v3132_v1 }
 0xac5   :  { %2751 = vmatprep.subr.bf16.mxu0 %v3132_v1 }
 0xac8   :  { %2752 = vmatpush3.bf16.msra.mxu0 %v3267_v42 }
 0xac9   :  { %2765 = vmatprep.subr.bf16.mxu0 %v3132_v1 }
 0xb86   :  { %v914_v5 = vpop.f32.mrb[20].mxu0  ;;  %v955_v6 = vpop.f32.mrb[28].mxu1 }
 0xb87   :  { %v3428_v7 = vadd.f32 %v914_v5, %v3377_v62  ;;  %v2707_v8 = vpop.f32.mrb[21].mxu0  ;;  %v2715_v9 = vpop.f32.mrb[29].mxu1  ;;  %v962_v34 = vrot.slane %v955_v6, 2 }
 0xb88   :  { %v917_v12 = vpop.f32.mrb[22].mxu0  ;;  %v958_v13 = vpop.f32.mrb[30].mxu1 }
 0xb89   :  { %v2708_v14 = vpop.f32.mrb[23].mxu0  ;;  %v2716_v15 = vpop.f32.mrb[31].mxu1  ;;  %v964_v35 = vadd.f32 %v962_v34, %v3236_v24 }
 0xb8b   :  { %v2441_v36 = vmul.f32 -1.442695, %v964_v35 }
 0xb8e   :  { %v999_v16 = vpop.f32.mrb[24].mxu0  ;;  %v1045_v17 = vpop.f32.mrb[32].mxu1 }
 0xb8f   :  { %v1052_v18 = vrot.slane %v1045_v17, 2  ;;  %v2723_v19 = vpop.f32.mrb[25].mxu0  ;;  %v2731_v11 = vpop.f32.mrb[33].mxu1  ;;  %v1006_v25 = vrot.slane %v999_v16, 2 }
 0xb90   :  { %v1002_v20 = vpop.f32.mrb[26].mxu0  ;;  %v1048_v21 = vpop.f32.mrb[34].mxu1 }
 0xb91   :  { %1053 = vrot.lane.b32.xlu0 %v1052_v18, %s3129_s11  ;;  %v2724_v22 = vpop.f32.mrb[27].mxu0  ;;  %v2732_v23 = vpop.f32.mrb[35].mxu1 }
 0xb95   :  { %1007 = vrot.lane.b32.xlu0 %v1006_v25, %s3134_s2 }
 0xb96   :  { %v1091_v62 = vpop.f32.mrb[28].mxu0 }
 0xb97   :  { %v1098_v26 = vrot.slane %v1091_v62, 2  ;;  %v2739_v28 = vpop.f32.mrb[29].mxu0 }
 0xb98   :  { %v1094_v29 = vpop.f32.mrb[30].mxu0 }
 0xb99   :  { %1099 = vrot.lane.b32.xlu0 %v1098_v26, %s3135_s20  ;;  %v2740_v30 = vpop.f32.mrb[31].mxu0 }
 0xc03   :  { %v1054_v31 = vpop.permute.xlu0 %1053 }
 0xc04   :  { %v1056_v32 = vadd.f32 %v1054_v31, %v3236_v24 }
 0xc06   :  { %2988 = vtanh.f32 %v1056_v32 }
 0xc07   :  { %2990 = vpow2.f32 %v2441_v36  ;;  %v1008_v48 = vpop.permute.xlu0 %1007 }
 0xc08   :  { %v1010_v52 = vadd.f32 %v1008_v48, %v3236_v24 }
 0xc0a   :  { %v2442_v54 = vmul.f32 -1.442695, %v1010_v52 }
 0xc0b   :  { %v1100_v2 = vpop.permute.xlu0 %1099 }
 0xc0c   :  { %v1102_v53 = vadd.f32 %v1100_v2, %v3236_v24  ;;  %v2940_v2 = vld [vmem:[#allocation2 + $0x40] sm:$0xff]  }
 0xc0e   :  { %v2443_v3 = vmul.f32 -1.442695, %v1102_v53  ;;  %v2941_v53 = vld [vmem:[#allocation2 + $0x48] sm:$0xff]  }
 0xc10   :  { %v2989_v33 = vpop.eup %2988 }
 0xc11   :  { %1127 = vrot.lane.b32.xlu1 %v2989_v33, %s3129_s11  ;;  %v2991_v43 = vpop.eup %2990 }
 0xc12   :  { %v1106_v44 = vadd.f32 1.0, %v2991_v43 }
 0xc14   :  { %2992 = vrcp.f32 %v1106_v44 }
 0xc15   :  { %2994 = vpow2.f32 %v2442_v54 }
 0xc1e   :  { %v2993_v45 = vpop.eup %2992 }
 0xc1f   :  { %v2995_v55 = vpop.eup %2994 }
 0xc20   :  { %v1112_v56 = vadd.f32 1.0, %v2995_v55 }
 0xc22   :  { %2996 = vrcp.f32 %v1112_v56 }
 0xc2c   :  { %v2997_v57 = vpop.eup %2996 }
 0xc2d   :  { %v1125_v58 = vmul.f32 %v2997_v57, %v1123_v37 }
 0xc83   :  { %v1128_v46 = vpop.permute.xlu1 %1127 }
 0xc84   :  { %v1130_v38 = vmul.f32 %v2993_v45, %v1128_v46 }
 0xc86   :  { %1132 = vrot.lane.b32.xlu1 %v1130_v38, %s3134_s2 }
 0xcf8   :  { %v1133_v59 = vpop.permute.xlu1 %1132 }
 0xcf9   :  { %v3439_v60 = vadd.f32 %v1133_v59, %v1125_v58 }
 0xcfb   :  { %2998 = vtanh.f32 %v3439_v60  ;;  %v1403_v59 = vrot.slane %v3439_v60, 6 }
 0xcfc   :  { %3000 = vpow2.f32 %v2443_v3 }
 0xd05   :  { %v2999_v0 = vpop.eup %2998 }
 0xd06   :  { %1138 = vrot.lane.b32.xlu1 %v2999_v0, %s3129_s11  ;;  %v3001_v4 = vpop.eup %3000 }
 0xd07   :  { %v1119_v5 = vadd.f32 1.0, %v3001_v4 }
 0xd09   :  { %3002 = vrcp.f32 %v1119_v5 }
 0xd13   :  { %v3003_v6 = vpop.eup %3002 }
 0xd78   :  { %v1139_v8 = vpop.permute.xlu1 %1138 }
 0xd79   :  { %v1141_v9 = vmul.f32 %v3003_v6, %v1139_v8 }
 0xd7b   :  { %v1142_v12 = vpack.c.bf16 %v1141_v9, %v1141_v9 }
 0xd7d   :  { %v1148_v13 = vrot.slane %v1142_v12, 3 }
 0xd7f   :  { %1149 = vrot.lane.b32.xlu0 %v1148_v13, %s3134_s2 }
 0xdf1   :  { %v1150_v14 = vpop.permute.xlu0 %1149 }
 0xdf2   :  { %2746 = vmatmul.mubr.msk.bf16.vlgmr.msra.gmra.mrb[36].mxu1 %vm258_vm6, %v1150_v14  ;;  %2754 = vmatmul.mubr.msk.bf16.vlgmr.msra.gmra.mrb[32].mxu0 %vm258_vm6, %v1150_v14 }
 0xdf3   :  { %2766 = vmatpush3.bf16.msra.mxu0 %v3250_v39  ;;  %2758 = vmatpush3.bf16.msra.mxu1 %v3280_v47 }
 0xdf4   :  { %2767 = vmatprep.subr.bf16.mxu0 %v3132_v1  ;;  %2759 = vmatprep.subr.bf16.mxu1 %v3132_v1 }
 0xdf5   :  { %2761 = vmatprep.mubr.msk.bf16.mxu1 %vm3133_vm1, %v3132_v1  ;;  %2769 = vmatprep.mubr.msk.bf16.mxu0 %vm3133_vm1, %v3132_v1 }
 0xdf7   :  { %2768 = vmatpush3.bf16.msra.mxu0 %v3262_v41  ;;  %2760 = vmatpush3.bf16.msra.mxu1 %v3288_v49 }
 0xdf8   :  { %2773 = vmatprep.subr.bf16.mxu1 %v3132_v1  ;;  %2781 = vmatprep.subr.bf16.mxu0 %v3132_v1 }
 0xdfa   :  { %2762 = vmatmul.mubr.msk.bf16.vlgmr.msra.gmra.mrb[40].mxu1 %vm258_vm6, %v1150_v14  ;;  %2770 = vmatmul.mubr.msk.bf16.vlgmr.msra.gmra.mrb[36].mxu0 %vm258_vm6, %v1150_v14 }
 0xdfb   :  { %2774 = vmatpush3.bf16.msra.mxu1 %v3299_v50  ;;  %2777 = vmatprep.mubr.msk.bf16.mxu1 %vm3133_vm1, %v3132_v1 }
 0xdfc   :  { %2775 = vmatprep.subr.bf16.mxu1 %v3132_v1  ;;  %2785 = vmatprep.mubr.msk.bf16.mxu0 %vm3133_vm1, %v3132_v1 }
 0xdfd   :  { %2782 = vmatpush3.bf16.msra.mxu0 %v2940_v2 }
 0xdfe   :  { %2783 = vmatprep.subr.bf16.mxu0 %v3132_v1 }
 0xdff   :  { %2776 = vmatpush3.bf16.msra.mxu1 %v3307_v51 }
 0xe00   :  { %2789 = vmatprep.subr.bf16.mxu1 %v3132_v1 }
 0xe01   :  { %2784 = vmatpush3.bf16.msra.mxu0 %v2941_v53 }
 0xe02   :  { %2778 = vmatmul.mubr.msk.bf16.vlgmr.msra.gmra.mrb[44].mxu1 %vm258_vm6, %v1150_v14  ;;  %2797 = vmatprep.subr.bf16.mxu0 %v3132_v1 }
 0xe03   :  { %2790 = vmatpush3.bf16.msra.mxu1 %v3255_v40  ;;  %2793 = vmatprep.mubr.msk.bf16.mxu1 %vm3133_vm1, %v3132_v1 }
 0xe04   :  { %2791 = vmatprep.subr.bf16.mxu1 %v3132_v1 }
 0xe07   :  { %2792 = vmatpush3.bf16.msra.mxu1 %v3267_v42 }
 0xe08   :  { %2805 = vmatprep.subr.bf16.mxu1 %v3132_v1 }
 0xec5   :  { %v1200_v24 = vpop.f32.mrb[36].mxu1  ;;  %v1241_v15 = vpop.f32.mrb[32].mxu0 }
 0xec6   :  { %v3479_v16 = vadd.f32 %v1200_v24, %v3428_v7  ;;  %v2747_v17 = vpop.f32.mrb[37].mxu1  ;;  %v2755_v18 = vpop.f32.mrb[33].mxu0  ;;  %v1247_v43 = vadd.f32 %v1241_v15, %v3238_v27 }
 0xec7   :  { %v1203_v19 = vpop.f32.mrb[38].mxu1  ;;  %v1244_v11 = vpop.f32.mrb[34].mxu0 }
 0xec8   :  { %v2748_v20 = vpop.f32.mrb[39].mxu1  ;;  %v2756_v21 = vpop.f32.mrb[35].mxu0  ;;  %v2451_v44 = vmul.f32 -1.442695, %v1247_v43 }
 0xecd   :  { %v1282_v22 = vpop.f32.mrb[40].mxu1  ;;  %v1327_v23 = vpop.f32.mrb[36].mxu0 }
 0xece   :  { %v2763_v25 = vpop.f32.mrb[41].mxu1  ;;  %1334 = vrot.lane.b32.xlu1 %v1327_v23, %s3129_s11  ;;  %v2771_v62 = vpop.f32.mrb[37].mxu0 }
 0xecf   :  { %v1285_v26 = vpop.f32.mrb[42].mxu1  ;;  %v1330_v28 = vpop.f32.mrb[38].mxu0 }
 0xed0   :  { %v2764_v29 = vpop.f32.mrb[43].mxu1  ;;  %v2772_v30 = vpop.f32.mrb[39].mxu0 }
 0xed2   :  { %1289 = vrot.lane.b32.xlu1 %v1282_v22, %s3134_s2 }
 0xed5   :  { %v1372_v7 = vpop.f32.mrb[44].mxu1 }
 0xed6   :  { %v2779_v31 = vpop.f32.mrb[45].mxu1  ;;  %1379 = vrot.lane.b32.xlu1 %v1372_v7, %s3135_s20 }
 0xed7   :  { %v1375_v32 = vpop.f32.mrb[46].mxu1 }
 0xed8   :  { %v2780_v33 = vpop.f32.mrb[47].mxu1 }
 0xf40   :  { %v1335_v34 = vpop.permute.xlu1 %1334 }
 0xf41   :  { %v1337_v35 = vadd.f32 %v1335_v34, %v3238_v27 }
 0xf43   :  { %3004 = vtanh.f32 %v1337_v35 }
 0xf44   :  { %3006 = vpow2.f32 %v2451_v44  ;;  %v1290_v54 = vpop.permute.xlu1 %1289 }
 0xf45   :  { %v1292_v55 = vadd.f32 %v1290_v54, %v3238_v27 }
 0xf47   :  { %v2452_v56 = vmul.f32 -1.442695, %v1292_v55 }
 0xf48   :  { %v1380_v4 = vpop.permute.xlu1 %1379 }
 0xf49   :  { %v1382_v60 = vadd.f32 %v1380_v4, %v3238_v27 }
 0xf4b   :  { %v2453_v5 = vmul.f32 -1.442695, %v1382_v60 }
 0xf4d   :  { %v3005_v36 = vpop.eup %3004 }
 0xf4e   :  { %1407 = vrot.lane.b32.xlu0 %v3005_v36, %s3129_s11  ;;  %v3007_v45 = vpop.eup %3006 }
 0xf4f   :  { %v1386_v46 = vadd.f32 1.0, %v3007_v45 }
 0xf51   :  { %3008 = vrcp.f32 %v1386_v46 }
 0xf52   :  { %3010 = vpow2.f32 %v2452_v56 }
 0xf5b   :  { %v3009_v38 = vpop.eup %3008 }
 0xf5c   :  { %v3011_v57 = vpop.eup %3010 }
 0xf5d   :  { %v1392_v37 = vadd.f32 1.0, %v3011_v57 }
 0xf5f   :  { %3012 = vrcp.f32 %v1392_v37 }
 0xf69   :  { %v3013_v58 = vpop.eup %3012 }
 0xf6a   :  { %v1405_v61 = vmul.f32 %v3013_v58, %v1403_v59 }
 0xfc0   :  { %v1408_v48 = vpop.permute.xlu0 %1407 }
 0xfc1   :  { %v1410_v52 = vmul.f32 %v3009_v38, %v1408_v48 }
 0xfc3   :  { %1412 = vrot.lane.b32.xlu0 %v1410_v52, %s3134_s2 }
0x1035   :  { %v1413_v63 = vpop.permute.xlu0 %1412 }
0x1036   :  { %v3490_v0 = vadd.f32 %v1413_v63, %v1405_v61  ;;  %v2942_v61 = vld [vmem:[#allocation2 + $0x50] sm:$0xff]   ;;  %v2943_v63 = vld [vmem:[#allocation2 + $0x58] sm:$0xff]  }
0x1038   :  { %3014 = vtanh.f32 %v3490_v0  ;;  %v1688_v57 = vrot.slane %v3490_v0, 6 }
0x1039   :  { %3016 = vpow2.f32 %v2453_v5 }
0x1042   :  { %v3015_v3 = vpop.eup %3014 }
0x1043   :  { %1418 = vrot.lane.b32.xlu0 %v3015_v3, %s3129_s11  ;;  %v3017_v6 = vpop.eup %3016 }
0x1044   :  { %v1399_v8 = vadd.f32 1.0, %v3017_v6 }
0x1046   :  { %3018 = vrcp.f32 %v1399_v8 }
0x1050   :  { %v3019_v9 = vpop.eup %3018 }
0x10b5   :  { %v1419_v12 = vpop.permute.xlu0 %1418 }
0x10b6   :  { %v1421_v13 = vmul.f32 %v3019_v9, %v1419_v12 }
0x10b8   :  { %v1422_v14 = vpack.c.bf16 %v1421_v13, %v1421_v13 }
0x10ba   :  { %1428 = vrot.lane.b32.xlu1 %v1422_v14, %s3134_s2  ;;  %v3554_v14 = vld [vmem:[%s3695_s3 + $0x20] sm:$0xff]  }
0x112c   :  { %v1429_v24 = vpop.permute.xlu1 %1428 }
0x112d   :  { %2786 = vmatmul.mubr.msk.bf16.vlgmr.msra.gmra.mrb[40].mxu0 %vm258_vm6, %v1429_v24  ;;  %2794 = vmatmul.mubr.msk.bf16.vlgmr.msra.gmra.mrb[48].mxu1 %vm258_vm6, %v1429_v24 }
0x112e   :  { %2806 = vmatpush3.bf16.msra.mxu1 %v3250_v39  ;;  %2798 = vmatpush3.bf16.msra.mxu0 %v3280_v47 }
0x112f   :  { %2807 = vmatprep.subr.bf16.mxu1 %v3132_v1  ;;  %2799 = vmatprep.subr.bf16.mxu0 %v3132_v1 }
0x1130   :  { %2801 = vmatprep.mubr.msk.bf16.mxu0 %vm3133_vm1, %v3132_v1  ;;  %2809 = vmatprep.mubr.msk.bf16.mxu1 %vm3133_vm1, %v3132_v1 }
0x1132   :  { %2808 = vmatpush3.bf16.msra.mxu1 %v3262_v41  ;;  %2800 = vmatpush3.bf16.msra.mxu0 %v3288_v49 }
0x1133   :  { %2813 = vmatprep.subr.bf16.mxu0 %v3132_v1  ;;  %2821 = vmatprep.subr.bf16.mxu1 %v3132_v1 }
0x1135   :  { %2802 = vmatmul.mubr.msk.bf16.vlgmr.msra.gmra.mrb[44].mxu0 %vm258_vm6, %v1429_v24  ;;  %2810 = vmatmul.mubr.msk.bf16.vlgmr.msra.gmra.mrb[52].mxu1 %vm258_vm6, %v1429_v24 }
0x1136   :  { %2814 = vmatpush3.bf16.msra.mxu0 %v3299_v50  ;;  %2817 = vmatprep.mubr.msk.bf16.mxu0 %vm3133_vm1, %v3132_v1 }
0x1137   :  { %2815 = vmatprep.subr.bf16.mxu0 %v3132_v1  ;;  %2825 = vmatprep.mubr.msk.bf16.mxu1 %vm3133_vm1, %v3132_v1 }
0x1138   :  { %2822 = vmatpush3.bf16.msra.mxu1 %v2942_v61 }
0x1139   :  { %2823 = vmatprep.subr.bf16.mxu1 %v3132_v1 }
0x113a   :  { %2816 = vmatpush3.bf16.msra.mxu0 %v3307_v51 }
0x113b   :  { %2829 = vmatprep.subr.bf16.mxu0 %v3132_v1 }
0x113c   :  { %2824 = vmatpush3.bf16.msra.mxu1 %v2943_v63 }
0x113d   :  { %2818 = vmatmul.mubr.msk.bf16.vlgmr.msra.gmra.mrb[48].mxu0 %vm258_vm6, %v1429_v24  ;;  %2837 = vmatprep.subr.bf16.mxu1 %v3132_v1  ;;  %v3560_v24 = vld [vmem:[%s3695_s3 + $0x10] sm:$0xff]  }
0x113e   :  { %2830 = vmatpush3.bf16.msra.mxu0 %v3255_v40  ;;  %2833 = vmatprep.mubr.msk.bf16.mxu0 %vm3133_vm1, %v3132_v1 }
0x113f   :  { %2831 = vmatprep.subr.bf16.mxu0 %v3132_v1 }
0x1142   :  { %2832 = vmatpush3.bf16.msra.mxu0 %v3267_v42 }
0x1143   :  { %2845 = vmatprep.subr.bf16.mxu0 %v3132_v1 }
0x1200   :  { %v1479_v39 = vpop.f32.mrb[40].mxu0  ;;  %v1520_v41 = vpop.f32.mrb[48].mxu1 }
0x1201   :  { %v3530_v47 = vadd.f32 %v1479_v39, %v3479_v16  ;;  %v2787_v49 = vpop.f32.mrb[41].mxu0  ;;  %v2795_v50 = vpop.f32.mrb[49].mxu1  ;;  %v1527_v33 = vrot.slane %v1520_v41, 6  ;;  %v3572_v39 = vld [vmem:[%s3695_s3 + $0x28] sm:$0xff]   ;;  %v3578_v41 = vld [vmem:[%s3695_s3 + $0x18] sm:$0xff]  }
0x1202   :  { %v1482_v51 = vpop.f32.mrb[42].mxu0  ;;  %v1523_v15 = vpop.f32.mrb[50].mxu1  ;;  %v3588_v49 = vld [vmem:[%s3695_s3 + $0x30] sm:$0xff]   ;;  %v3599_v50 = vld [vmem:[%s3695_s3 + $0x38] sm:$0xff]  }
0x1203   :  { %v2788_v17 = vpop.f32.mrb[43].mxu0  ;;  %v2796_v40 = vpop.f32.mrb[51].mxu1  ;;  %v1529_v34 = vadd.f32 %v1527_v33, %v3238_v27  ;;  %v3078_v51 = vld [vmem:[%s3695_s3] sm:$0xff]   ;;  %v3079_v15 = vld [vmem:[%s3695_s3 + $0x8] sm:$0xff]  }
0x1205   :  { %v2461_v35 = vmul.f32 -1.442695, %v1529_v34 }
0x1208   :  { %v1564_v18 = vpop.f32.mrb[44].mxu0  ;;  %v1610_v19 = vpop.f32.mrb[52].mxu1 }
0x1209   :  { %v1617_v11 = vrot.slane %v1610_v19, 6  ;;  %v2803_v20 = vpop.f32.mrb[45].mxu0  ;;  %v2811_v21 = vpop.f32.mrb[53].mxu1  ;;  %v1571_v62 = vrot.slane %v1564_v18, 6 }
0x120a   :  { %v1567_v22 = vpop.f32.mrb[46].mxu0  ;;  %v1613_v42 = vpop.f32.mrb[54].mxu1 }
0x120b   :  { %1618 = vrot.lane.b32.xlu0 %v1617_v11, %s3129_s11  ;;  %v2804_v23 = vpop.f32.mrb[47].mxu0  ;;  %v2812_v25 = vpop.f32.mrb[55].mxu1 }
0x120f   :  { %1572 = vrot.lane.b32.xlu0 %v1571_v62, %s3134_s2 }
0x1210   :  { %v1656_v16 = vpop.f32.mrb[48].mxu0 }
0x1211   :  { %v1663_v26 = vrot.slane %v1656_v16, 6  ;;  %v2819_v28 = vpop.f32.mrb[49].mxu0 }
0x1212   :  { %v1659_v29 = vpop.f32.mrb[50].mxu0 }
0x1213   :  { %1664 = vrot.lane.b32.xlu0 %v1663_v26, %s3135_s20  ;;  %v2820_v30 = vpop.f32.mrb[51].mxu0 }
0x127d   :  { %v1619_v7 = vpop.permute.xlu0 %1618 }
0x127e   :  { %v1621_v31 = vadd.f32 %v1619_v7, %v3238_v27 }
0x1280   :  { %3020 = vtanh.f32 %v1621_v31 }
0x1281   :  { %3022 = vpow2.f32 %v2461_v35  ;;  %v1573_v38 = vpop.permute.xlu0 %1572 }
0x1282   :  { %v1575_v48 = vadd.f32 %v1573_v38, %v3238_v27 }
0x1284   :  { %v2462_v52 = vmul.f32 -1.442695, %v1575_v48 }
0x1285   :  { %v1665_v53 = vpop.permute.xlu0 %1664 }
0x1286   :  { %v1667_v0 = vadd.f32 %v1665_v53, %v3238_v27 }
0x1288   :  { %v2463_v3 = vmul.f32 -1.442695, %v1667_v0 }
0x128a   :  { %v3021_v32 = vpop.eup %3020 }
0x128b   :  { %1692 = vrot.lane.b32.xlu1 %v3021_v32, %s3129_s11  ;;  %v3023_v36 = vpop.eup %3022 }
0x128c   :  { %v1671_v43 = vadd.f32 1.0, %v3023_v36 }
0x128e   :  { %3024 = vrcp.f32 %v1671_v43 }
0x128f   :  { %3026 = vpow2.f32 %v2462_v52 }
0x1298   :  { %v3025_v44 = vpop.eup %3024 }
0x1299   :  { %v3027_v54 = vpop.eup %3026 }
0x129a   :  { %v1677_v55 = vadd.f32 1.0, %v3027_v54 }
0x129c   :  { %3028 = vrcp.f32 %v1677_v55 }
0x12a6   :  { %v3029_v56 = vpop.eup %3028 }
0x12a7   :  { %v1690_v37 = vmul.f32 %v3029_v56, %v1688_v57 }
0x12fd   :  { %v1693_v45 = vpop.permute.xlu1 %1692 }
0x12fe   :  { %v1695_v46 = vmul.f32 %v3025_v44, %v1693_v45 }
0x1300   :  { %1697 = vrot.lane.b32.xlu1 %v1695_v46, %s3134_s2 }
0x1372   :  { %v1698_v58 = vpop.permute.xlu1 %1697 }
0x1373   :  { %v3541_v59 = vadd.f32 %v1698_v58, %v1690_v37 }
0x1375   :  { %3030 = vtanh.f32 %v3541_v59  ;;  %v1974_v53 = vrot.slane %v3541_v59, 6 }
0x1376   :  { %3032 = vpow2.f32 %v2463_v3 }
0x137f   :  { %v3031_v2 = vpop.eup %3030 }
0x1380   :  { %1703 = vrot.lane.b32.xlu1 %v3031_v2, %s3129_s11  ;;  %v3033_v4 = vpop.eup %3032 }
0x1381   :  { %v1684_v60 = vadd.f32 1.0, %v3033_v4 }
0x1383   :  { %3034 = vrcp.f32 %v1684_v60  ;;  %v2944_v60 = vld [vmem:[#allocation2 + $0x60] sm:$0xff]  }
0x138d   :  { %v3035_v5 = vpop.eup %3034 }
0x13f2   :  { %v1704_v6 = vpop.permute.xlu1 %1703 }
0x13f3   :  { %v1706_v8 = vmul.f32 %v3035_v5, %v1704_v6  ;;  %v2945_v5 = vld [vmem:[#allocation2 + $0x68] sm:$0xff]  }
0x13f5   :  { %v1707_v9 = vpack.c.bf16 %v1706_v8, %v1706_v8 }
0x13f7   :  { %v1713_v12 = vrot.slane %v1707_v9, 1 }
0x13f9   :  { %1714 = vrot.lane.b32.xlu0 %v1713_v12, %s3134_s2 }
0x146b   :  { %v1715_v13 = vpop.permute.xlu0 %1714 }
0x146c   :  { %2826 = vmatmul.mubr.msk.bf16.vlgmr.msra.gmra.mrb[56].mxu1 %vm258_vm6, %v1715_v13  ;;  %2834 = vmatmul.mubr.msk.bf16.vlgmr.msra.gmra.mrb[52].mxu0 %vm258_vm6, %v1715_v13 }
0x146d   :  { %2846 = vmatpush3.bf16.msra.mxu0 %v3554_v14  ;;  %2838 = vmatpush3.bf16.msra.mxu1 %v3560_v24 }
0x146e   :  { %2847 = vmatprep.subr.bf16.mxu0 %v3132_v1  ;;  %2839 = vmatprep.subr.bf16.mxu1 %v3132_v1 }
0x146f   :  { %2841 = vmatprep.mubr.msk.bf16.mxu1 %vm3133_vm1, %v3132_v1  ;;  %2849 = vmatprep.mubr.msk.bf16.mxu0 %vm3133_vm1, %v3132_v1 }
0x1471   :  { %2848 = vmatpush3.bf16.msra.mxu0 %v3572_v39  ;;  %2840 = vmatpush3.bf16.msra.mxu1 %v3578_v41 }
0x1472   :  { %2853 = vmatprep.subr.bf16.mxu1 %v3132_v1  ;;  %2861 = vmatprep.subr.bf16.mxu0 %v3132_v1 }
0x1474   :  { %2842 = vmatmul.mubr.msk.bf16.vlgmr.msra.gmra.mrb[60].mxu1 %vm258_vm6, %v1715_v13  ;;  %2850 = vmatmul.mubr.msk.bf16.vlgmr.msra.gmra.mrb[56].mxu0 %vm258_vm6, %v1715_v13 }
0x1475   :  { %2854 = vmatpush3.bf16.msra.mxu1 %v3588_v49  ;;  %2857 = vmatprep.mubr.msk.bf16.mxu1 %vm3133_vm1, %v3132_v1 }
0x1476   :  { %2855 = vmatprep.subr.bf16.mxu1 %v3132_v1  ;;  %2865 = vmatprep.mubr.msk.bf16.mxu0 %vm3133_vm1, %v3132_v1 }
0x1477   :  { %2862 = vmatpush3.bf16.msra.mxu0 %v2944_v60  ;;  %v2947_v60 = vld [vmem:[#allocation2 + $0x78] sm:$0xff]  }
0x1478   :  { %2863 = vmatprep.subr.bf16.mxu0 %v3132_v1 }
0x1479   :  { %2856 = vmatpush3.bf16.msra.mxu1 %v3599_v50 }
0x147a   :  { %2869 = vmatprep.subr.bf16.mxu1 %v3132_v1 }
0x147b   :  { %2864 = vmatpush3.bf16.msra.mxu0 %v2945_v5 }
0x147c   :  { %2858 = vmatmul.mubr.msk.bf16.vlgmr.msra.gmra.mrb[64].mxu1 %vm258_vm6, %v1715_v13  ;;  %2877 = vmatprep.subr.bf16.mxu0 %v3132_v1 }
0x147d   :  { %2870 = vmatpush3.bf16.msra.mxu1 %v3078_v51  ;;  %2873 = vmatprep.mubr.msk.bf16.mxu1 %vm3133_vm1, %v3132_v1 }
0x147e   :  { %2871 = vmatprep.subr.bf16.mxu1 %v3132_v1 }
0x1481   :  { %2872 = vmatpush3.bf16.msra.mxu1 %v3079_v15 }
0x1482   :  { %2885 = vmatprep.subr.bf16.mxu1 %v3132_v1 }
0x153f   :  { %v1765_v17 = vpop.f32.mrb[56].mxu1  ;;  %v1806_v40 = vpop.f32.mrb[52].mxu0 }
0x1540   :  { %v3615_v18 = vadd.f32 %v1765_v17, %v3530_v47  ;;  %v2827_v19 = vpop.f32.mrb[57].mxu1  ;;  %v2835_v11 = vpop.f32.mrb[53].mxu0  ;;  %v1813_v45 = vrot.slane %v1806_v40, 4 }
0x1541   :  { %v1768_v20 = vpop.f32.mrb[58].mxu1  ;;  %v1809_v21 = vpop.f32.mrb[54].mxu0 }
0x1542   :  { %v2828_v22 = vpop.f32.mrb[59].mxu1  ;;  %v2836_v42 = vpop.f32.mrb[55].mxu0  ;;  %v1815_v46 = vadd.f32 %v1813_v45, %v3238_v27 }
0x1544   :  { %v2471_v38 = vmul.f32 -1.442695, %v1815_v46 }
0x1547   :  { %v1850_v23 = vpop.f32.mrb[60].mxu1  ;;  %v1896_v25 = vpop.f32.mrb[56].mxu0 }
0x1548   :  { %v1903_v62 = vrot.slane %v1896_v25, 4  ;;  %v2843_v16 = vpop.f32.mrb[61].mxu1  ;;  %v2851_v26 = vpop.f32.mrb[57].mxu0  ;;  %v1857_v31 = vrot.slane %v1850_v23, 4 }
0x1549   :  { %v1853_v28 = vpop.f32.mrb[62].mxu1  ;;  %v1899_v29 = vpop.f32.mrb[58].mxu0 }
0x154a   :  { %v2844_v30 = vpop.f32.mrb[63].mxu1  ;;  %1904 = vrot.lane.b32.xlu1 %v1903_v62, %s3129_s11  ;;  %v2852_v7 = vpop.f32.mrb[59].mxu0 }
0x154e   :  { %1858 = vrot.lane.b32.xlu1 %v1857_v31, %s3134_s2 }
0x154f   :  { %v1942_v47 = vpop.f32.mrb[64].mxu1 }
0x1550   :  { %v1949_v32 = vrot.slane %v1942_v47, 4  ;;  %v2859_v33 = vpop.f32.mrb[65].mxu1 }
0x1551   :  { %v1945_v34 = vpop.f32.mrb[66].mxu1 }
0x1552   :  { %v2860_v35 = vpop.f32.mrb[67].mxu1  ;;  %1950 = vrot.lane.b32.xlu1 %v1949_v32, %s3135_s20 }
0x15bc   :  { %v1905_v36 = vpop.permute.xlu1 %1904 }
0x15bd   :  { %v1907_v43 = vadd.f32 %v1905_v36, %v3238_v27 }
0x15bf   :  { %3036 = vtanh.f32 %v1907_v43 }
0x15c0   :  { %3038 = vpow2.f32 %v2471_v38  ;;  %v1859_v57 = vpop.permute.xlu1 %1858 }
0x15c1   :  { %v1861_v37 = vadd.f32 %v1859_v57, %v3238_v27 }
0x15c3   :  { %v2472_v58 = vmul.f32 -1.442695, %v1861_v37 }
0x15c4   :  { %v1951_v8 = vpop.permute.xlu1 %1950 }
0x15c5   :  { %v1953_v59 = vadd.f32 %v1951_v8, %v3238_v27 }
0x15c7   :  { %v2473_v9 = vmul.f32 -1.442695, %v1953_v59 }
0x15c9   :  { %v3037_v44 = vpop.eup %3036 }
0x15ca   :  { %1978 = vrot.lane.b32.xlu0 %v3037_v44, %s3129_s11  ;;  %v3039_v48 = vpop.eup %3038 }
0x15cb   :  { %v1957_v52 = vadd.f32 1.0, %v3039_v48 }
0x15cd   :  { %3040 = vrcp.f32 %v1957_v52 }
0x15ce   :  { %3042 = vpow2.f32 %v2472_v58 }
0x15d7   :  { %v3041_v54 = vpop.eup %3040 }
0x15d8   :  { %v3043_v61 = vpop.eup %3042 }
0x15d9   :  { %v1963_v63 = vadd.f32 1.0, %v3043_v61 }
0x15db   :  { %3044 = vrcp.f32 %v1963_v63 }
0x15e5   :  { %v3045_v2 = vpop.eup %3044 }
0x15e6   :  { %v1976_v0 = vmul.f32 %v3045_v2, %v1974_v53 }
0x163c   :  { %v1979_v55 = vpop.permute.xlu0 %1978 }
0x163d   :  { %v1981_v56 = vmul.f32 %v3041_v54, %v1979_v55 }
0x163f   :  { %1983 = vrot.lane.b32.xlu0 %v1981_v56, %s3134_s2 }
0x16b1   :  { %v1984_v3 = vpop.permute.xlu0 %1983 }
0x16b2   :  { %v3626_v4 = vadd.f32 %v1984_v3, %v1976_v0  ;;  %v2946_v3 = vld [vmem:[#allocation2 + $0x70] sm:$0xff]  }
0x16b4   :  { %3046 = vtanh.f32 %v3626_v4  ;;  %v2260_v63 = vrot.slane %v3626_v4, 6 }
0x16b5   :  { %3048 = vpow2.f32 %v2473_v9 }
0x16be   :  { %v3047_v6 = vpop.eup %3046 }
0x16bf   :  { %1989 = vrot.lane.b32.xlu0 %v3047_v6, %s3129_s11  ;;  %v3049_v12 = vpop.eup %3048 }
0x16c0   :  { %v1970_v13 = vadd.f32 1.0, %v3049_v12 }
0x16c2   :  { %3050 = vrcp.f32 %v1970_v13 }
0x16cc   :  { %v3051_v51 = vpop.eup %3050 }
0x1731   :  { %v1990_v15 = vpop.permute.xlu0 %1989 }
0x1732   :  { %v1992_v17 = vmul.f32 %v3051_v51, %v1990_v15 }
0x1734   :  { %v1993_v40 = vpack.c.bf16 %v1992_v17, %v1992_v17 }
0x1736   :  { %v1999_v19 = vrot.slane %v1993_v40, 2 }
0x1738   :  { %2000 = vrot.lane.b32.xlu1 %v1999_v19, %s3134_s2 }
0x17aa   :  { %v2001_v11 = vpop.permute.xlu1 %2000 }
0x17ab   :  { %2866 = vmatmul.mubr.msk.bf16.vlgmr.msra.gmra.mrb[60].mxu0 %vm258_vm6, %v2001_v11  ;;  %2874 = vmatmul.mubr.msk.bf16.vlgmr.msra.gmra.mrb[68].mxu1 %vm258_vm6, %v2001_v11 }
0x17ac   :  { %2886 = vmatpush3.bf16.msra.mxu1 %v3554_v14  ;;  %2878 = vmatpush3.bf16.msra.mxu0 %v3560_v24 }
0x17ad   :  { %2887 = vmatprep.subr.bf16.mxu1 %v3132_v1  ;;  %2879 = vmatprep.subr.bf16.mxu0 %v3132_v1 }
0x17ae   :  { %2881 = vmatprep.mubr.msk.bf16.mxu0 %vm3133_vm1, %v3132_v1  ;;  %2889 = vmatprep.mubr.msk.bf16.mxu1 %vm3133_vm1, %v3132_v1 }
0x17b0   :  { %2888 = vmatpush3.bf16.msra.mxu1 %v3572_v39  ;;  %2880 = vmatpush3.bf16.msra.mxu0 %v3578_v41 }
0x17b1   :  { %2893 = vmatprep.subr.bf16.mxu0 %v3132_v1  ;;  %2901 = vmatprep.subr.bf16.mxu1 %v3132_v1 }
0x17b3   :  { %2882 = vmatmul.mubr.msk.bf16.vlgmr.msra.gmra.mrb[64].mxu0 %vm258_vm6, %v2001_v11  ;;  %2890 = vmatmul.mubr.msk.bf16.vlgmr.msra.gmra.mrb[72].mxu1 %vm258_vm6, %v2001_v11 }
0x17b4   :  { %2894 = vmatpush3.bf16.msra.mxu0 %v3588_v49  ;;  %2897 = vmatprep.mubr.msk.bf16.mxu0 %vm3133_vm1, %v3132_v1 }
0x17b5   :  { %2895 = vmatprep.subr.bf16.mxu0 %v3132_v1  ;;  %2905 = vmatprep.mubr.msk.bf16.mxu1 %vm3133_vm1, %v3132_v1 }
0x17b6   :  { %2902 = vmatpush3.bf16.msra.mxu1 %v2946_v3 }
0x17b7   :  { %2903 = vmatprep.subr.bf16.mxu1 %v3132_v1 }
0x17b8   :  { %2896 = vmatpush3.bf16.msra.mxu0 %v3599_v50 }
0x17ba   :  { %2904 = vmatpush3.bf16.msra.mxu1 %v2947_v60 }
0x17bb   :  { %2898 = vmatmul.mubr.msk.bf16.vlgmr.msra.gmra.mrb[68].mxu0 %vm258_vm6, %v2001_v11 }
0x187e   :  { %v2051_v14 = vpop.f32.mrb[60].mxu0  ;;  %v2092_v24 = vpop.f32.mrb[68].mxu1 }
0x187f   :  { %v3659_v39 = vadd.f32 %v2051_v14, %v3615_v18  ;;  %v2867_v41 = vpop.f32.mrb[61].mxu0  ;;  %v2875_v20 = vpop.f32.mrb[69].mxu1  ;;  %v2099_v43 = vrot.slane %v2092_v24, 2 }
0x1880   :  { %v2054_v49 = vpop.f32.mrb[62].mxu0  ;;  %v2095_v21 = vpop.f32.mrb[70].mxu1 }
0x1881   :  { %v2868_v22 = vpop.f32.mrb[63].mxu0  ;;  %v2876_v42 = vpop.f32.mrb[71].mxu1  ;;  %v2101_v44 = vadd.f32 %v2099_v43, %v3238_v27 }
0x1883   :  { %v2481_v45 = vmul.f32 -1.442695, %v2101_v44 }
0x1886   :  { %v2136_v23 = vpop.f32.mrb[64].mxu0  ;;  %v2182_v25 = vpop.f32.mrb[72].mxu1 }
0x1887   :  { %v2189_v62 = vrot.slane %v2182_v25, 2  ;;  %v2883_v16 = vpop.f32.mrb[65].mxu0  ;;  %v2891_v26 = vpop.f32.mrb[73].mxu1  ;;  %v2143_v7 = vrot.slane %v2136_v23, 2 }
0x1888   :  { %v2139_v28 = vpop.f32.mrb[66].mxu0  ;;  %v2185_v50 = vpop.f32.mrb[74].mxu1 }
0x1889   :  { %2190 = vrot.lane.b32.xlu0 %v2189_v62, %s3129_s11  ;;  %v2884_v29 = vpop.f32.mrb[67].mxu0  ;;  %v2892_v30 = vpop.f32.mrb[75].mxu1 }
0x188d   :  { %2144 = vrot.lane.b32.xlu0 %v2143_v7, %s3134_s2 }
0x188e   :  { %v2228_v18 = vpop.f32.mrb[68].mxu0 }
0x188f   :  { %v2235_v31 = vrot.slane %v2228_v18, 2  ;;  %v2899_v47 = vpop.f32.mrb[69].mxu0 }
0x1890   :  { %v2231_v32 = vpop.f32.mrb[70].mxu0 }
0x1891   :  { %2236 = vrot.lane.b32.xlu0 %v2235_v31, %s3135_s20  ;;  %v2900_v33 = vpop.f32.mrb[71].mxu0 }
0x18fb   :  { %v2191_v34 = vpop.permute.xlu0 %2190 }
0x18fc   :  { %v2193_v35 = vadd.f32 %v2191_v34, %v3238_v27 }
0x18fe   :  { %3052 = vtanh.f32 %v2193_v35 }
0x18ff   :  { %3054 = vpow2.f32 %v2481_v45  ;;  %v2145_v55 = vpop.permute.xlu0 %2144 }
0x1900   :  { %v2147_v56 = vadd.f32 %v2145_v55, %v3238_v27 }
0x1902   :  { %v2482_v57 = vmul.f32 -1.442695, %v2147_v56 }
0x1903   :  { %v2237_v6 = vpop.permute.xlu0 %2236 }
0x1904   :  { %v2239_v8 = vadd.f32 %v2237_v6, %v3238_v27  ;;  %v2487_v27 = vld [vmem:[%s3698_s6] ss:$0 sm:$0xff]  ;;  %s3136_s6 = smov [#allocation5]  }
0x1906   :  { %v2483_v59 = vmul.f32 -1.442695, %v2239_v8 }
0x1908   :  { %v3053_v36 = vpop.eup %3052 }
0x1909   :  { %2264 = vrot.lane.b32.xlu1 %v3053_v36, %s3129_s11  ;;  %v3055_v46 = vpop.eup %3054 }
0x190a   :  { %v2243_v38 = vadd.f32 1.0, %v3055_v46 }
0x190c   :  { %3056 = vrcp.f32 %v2243_v38 }
0x190d   :  { %3058 = vpow2.f32 %v2482_v57 }
0x1916   :  { %v3057_v48 = vpop.eup %3056 }
0x1917   :  { %v3059_v37 = vpop.eup %3058 }
0x1918   :  { %v2249_v58 = vadd.f32 1.0, %v3059_v37 }
0x191a   :  { %3060 = vrcp.f32 %v2249_v58 }
0x1924   :  { %v3061_v61 = vpop.eup %3060 }
0x1925   :  { %v2262_v2 = vmul.f32 %v3061_v61, %v2260_v63 }
0x197b   :  { %v2265_v52 = vpop.permute.xlu1 %2264 }
0x197c   :  { %v2267_v54 = vmul.f32 %v3057_v48, %v2265_v52 }
0x197e   :  { %2269 = vrot.lane.b32.xlu1 %v2267_v54, %s3134_s2 }
0x19f0   :  { %v2270_v53 = vpop.permute.xlu1 %2269 }
0x19f1   :  { %v2272_v0 = vadd.f32 %v2270_v53, %v2262_v2 }
0x19f3   :  { %3062 = vtanh.f32 %v2272_v0 }
0x19f4   :  { %3064 = vpow2.f32 %v2483_v59 }
0x19fd   :  { %v3063_v5 = vpop.eup %3062 }
0x19fe   :  { %2275 = vrot.lane.b32.xlu1 %v3063_v5, %s3129_s11  ;;  %v3065_v9 = vpop.eup %3064 }
0x19ff   :  { %v2256_v4 = vadd.f32 1.0, %v3065_v9 }
0x1a01   :  { %3066 = vrcp.f32 %v2256_v4 }
0x1a0b   :  { %v3067_v12 = vpop.eup %3066 }
0x1a70   :  { %v2276_v13 = vpop.permute.xlu1 %2275 }
0x1a71   :  { %v2278_v51 = vmul.f32 %v3067_v12, %v2276_v13 }
0x1a73   :  { %v2279_v15 = vpack.c.bf16 %v2278_v51, %v2278_v51 }
0x1a75   :  { %v2285_v17 = vrot.slane %v2279_v15, 3 }
0x1a77   :  { %2286 = vrot.lane.b32.xlu0 %v2285_v17, %s3134_s2  ;;  %s2376_s2 = sshll.u32 %s3136_s6, 4  ;;  %s2377_s2 = int_to_ptr.vmem [resolvable:$true] %s2376_s2 }
0x1a78   :  { %s3102_s12 = scalar_lea.vmem %s2377_s2, 32  ;;  %p3107_p9 = scmp.lt.s32.totalorder %s2377_s2, %s2377_s2 }
0x1a79   :  { %p3103_p8 = scmp.ne.s32.totalorder %s2377_s2, %s3102_s12  ;;  %p3108_p10 = scmp.lt.s32.totalorder %s3102_s12, %s3102_s12 }
0x1a7b   :  { %p3109_p11 = por %p3108_p10, %p3107_p9 }
0x1a7d   :  { %p3110_p12 = pnand %p3109_p11, %p3103_p8 }
0x1ae9   :  { %v2287_v1 = vpop.permute.xlu0 %2286 }
0x1aea   :  { %2906 = vmatmul.mubr.msk.bf16.vlgmr.msra.gmra.mrb[76].mxu1 %vm258_vm6, %v2287_v1 }
0x1bbd   :  { %v2337_v40 = vpop.f32.mrb[76].mxu1 }
0x1bbe   :  { %v2343_v19 = vadd.f32 %v2337_v40, %v3659_v39  ;;  %v2907_v11 = vpop.f32.mrb[77].mxu1 }
0x1bbf   :  { %v2340_v14 = vpop.f32.mrb[78].mxu1 }
0x1bc0   :  { %v2351_v24 = vadd.f32 %v2487_v27, %v2343_v19  ;;  %v2908_v41 = vpop.f32.mrb[79].mxu1 }
0x1bc2   :  { %v2353_v20 = vsel %vm2352_vm7, %v2351_v24, -1e+30 }
0x1bc3   :  { %v2355_v49 = vsel %vm2354_vm8, %v2353_v20, -inf }
0x1bc4   :  { %2356 = vmax.xlane.f32.xlu1 %v2355_v49 }
0x1c51   :  { %v2357_v21 = vpop.xlane.xlu1 %2356 }
0x1c52   :  { %v2358_v22 = vsub.f32 %v2353_v20, %v2357_v21 }
0x1c54   :  { %v2359_v42 = vmul.f32 1.442695, %v2358_v22 }
0x1c56   :  { %3068 = vpow2.f32 %v2359_v42 }
0x1c60   :  { %v3069_v23 = vpop.eup %3068 }
0x1c61   :  { %v2361_v25 = vsel %vm2352_vm7, %v3069_v23, 0.0 }
0x1c62   :  { %v2362_v62 = vsel %vm2354_vm8, %v2361_v25, 0.0 }
0x1c63   :  { %2363 = vadd.xlane.f32.xlu0 %v2362_v62 }
0x1cf0   :  { %v2364_v16 = vpop.xlane.xlu0 %2363 }
0x1cf1   :  { %3070 = vlog2.f32 %v2364_v16 }
0x1cfb   :  { %v3071_v39 = vpop.eup %3070 }
0x1cfc   :  { %v2366_v26 = vmul.f32 0.6931472, %v3071_v39 }
0x1cfe   :  { %v2367_v10 = vadd.f32 %v2366_v26, %v2357_v21 }
0x1d00   :  { %v2368_v28 = vsub.f32 %v2351_v24, %v2367_v10 }
0x1d02   :  { %2369 = vst [vmem:[#allocation5] sm:$0x3] %v2368_v28 }
0x1d03   :  { %3113 = shalt.err (!%p3110_p12)
}
0x1d04   :  { %s3114_s15 = scalar_lea.hbm %s3699_s7, 32 }
0x1d05   :  { %p3115_p13 = scmp.ne.s32.totalorder %s3699_s7, %s3114_s15  ;;  %p3118_p0 = scmp.lt.u32.totalorder %s3114_s15, %s3699_s7 }
0x1d07   :  { %p3120_p1 = pnand %p3118_p0, %p3115_p13 }
0x1d09   :  { %3123 = shalt.err (!%p3120_p1)
}
0x1d0a   :  { %2379 = dma.vmem_to_hbm [thread:$0]  %s2377_s2, 32, %s3699_s7, [#allocation4]  }
0x1d0b   :  { %3126 = dma.done.wait [#allocation4], 32  }
0x1d0c   :  { %3127 = vsyncadd [#allocation4], 4294967264 }
0x1d0d   :  { %2383 = vsyncpa [#allocation3], 1 }
0x1d0e   :  { %2384 = vsyncpa [#allocation4], 1 }

</bundles_post_ra>
